<compile_context>
chip_gen: v7x
topology: tpu7x:2x2x1
jax: 0.10.0
libtpu: 0.0.40
codegen_flags: <defaults>
</compile_context>

<pallas_src>
import jax
import jax.numpy as jnp
from jax import lax
from jax.experimental import pallas as pl
from jax.experimental.pallas import tpu as pltpu

# ----------------------------- configuration -------------------------------
B = 2          # batch
NUM_OBJS = 1   # v is [B, 1, C, H, W]; forward squeezes dim 1
C_IN = 3       # image channels
IMG = 16       # image spatial size
SEQ = 8        # question length
VOCAB = 64     # vocabulary size
EMB = 16       # word embedding dim
HID = 32       # question (GRU) hidden dim == q_dim
CONV_C = 16    # conv channels in image encoder stand-in
V_DIM = 32     # image feature dim (stand-in for ResNet50's 2048)
ATT = 32       # attention hidden dim (mid_dim); also output dim of v_att
KH = KW = 3
STRIDE = 2
PAD = 1
K_PATCH = C_IN * KH * KW          # 27
K_PAD = 32                        # padded contraction; col 27 == 1.0 folds conv bias
R_IMG = (IMG // STRIDE) ** 2      # 64 spatial positions after stride-2 conv
N_REGIONS = 1                     # ResNet50(fc=Identity) -> one global feature region
ROWS = 8                          # sublane-tile row count used for all "batch" tensors
OUT_LANES = 128                   # lane-dense output slab width

# packed weight-slab row offsets (all multiples of 8 -> tile-aligned views)
W_CONV = 0                          # [K_PAD, CONV_C]      conv weights + bias row
W_PROJ = W_CONV + K_PAD             # [CONV_C, V_DIM]
W_WX = W_PROJ + 16                  # [EMB, 3*HID]
W_WH = W_WX + 16                    # [HID, 3*HID]
W_QV = W_WH + HID                   # [HID+V_DIM, 3*ATT]   blockdiag(wq1, wv1|wv2)
W_Q2 = W_QV + (HID + V_DIM)         # [ATT, ATT]
W_ROWS = W_Q2 + ATT                 # 192
C_ROWS = 16                         # const slab rows (biases + GAP pool matrix)


def _vmem():
    return pl.BlockSpec(memory_space=pltpu.MemorySpace.VMEM)


# ------------------------------ fused Pallas kernel --------------------------
def san_fused_kernel(patches_ref, xseq_ref, w_ref, c_ref, out_ref):
    # ---- static, tile-aligned views into the two packed slabs ----
    conv_w = w_ref[W_CONV:W_CONV + K_PAD, 0:CONV_C]          # [32, 16]
    proj_w = w_ref[W_PROJ:W_PROJ + CONV_C, 0:V_DIM]          # [16, 32]
    gru_wx = w_ref[W_WX:W_WX + EMB, 0:3 * HID]               # [16, 96]
    gru_wh = w_ref[W_WH:W_WH + HID, 0:3 * HID]               # [32, 96]
    wqv = w_ref[W_QV:W_QV + HID + V_DIM, 0:3 * ATT]          # [64, 96]
    wq2 = w_ref[W_Q2:W_Q2 + ATT, 0:ATT]                      # [32, 32]

    proj_b = c_ref[0:1, 0:V_DIM]                             # [1, V_DIM]
    gru_bx = c_ref[1:2, 0:3 * HID]                           # [1, 3H]
    gru_bh = c_ref[2:3, 0:3 * HID]                           # [1, 3H]
    bq1 = c_ref[3:4, 0:ATT]                                  # [1, ATT]
    bq2 = c_ref[4:5, 0:ATT]                                  # [1, ATT]
    pool = c_ref[8:16, 0:B * R_IMG]                          # [8, 128] GAP matrix (host-built)

    # ---------------- image encoder: conv(im2col) + ReLU + GAP + linear + ReLU
    # patches: [B*R, K_PAD] with column 27 == 1.0 (conv bias folded into conv_w row 27)
    feat = jnp.maximum(
        jnp.dot(patches_ref[...], conv_w,
                preferred_element_type=jnp.float32), 0.0)                 # [B*R, CONV_C]
    pooled = jnp.dot(pool, feat, preferred_element_type=jnp.float32)      # [8, CONV_C]
    v_emb = jnp.maximum(
        jnp.dot(pooled, proj_w, preferred_element_type=jnp.float32)
        + proj_b, 0.0)                                                    # [8, V_DIM]

    # ---------------- GRU question encoder (input projection hoisted)
    # xseq: [SEQ*8, EMB]; rows t*8..t*8+B hold timestep t, padded rows are zero,
    # so every per-step slice below starts on an 8-sublane tile boundary.
    gi_all = jnp.dot(xseq_ref[...], gru_wx,
                     preferred_element_type=jnp.float32) + gru_bx         # [SEQ*8, 3H]
    gru_bh_b = jnp.broadcast_to(gru_bh, (ROWS, 3 * HID))                  # hoisted broadcast
    h = jnp.zeros((ROWS, HID), jnp.float32)
    for t in range(SEQ):                                                  # static unroll
        gi = gi_all[t * ROWS:(t + 1) * ROWS, :]                           # tile-aligned [8, 3H]
        gh = jnp.dot(h, gru_wh, preferred_element_type=jnp.float32) + gru_bh_b
        r = jax.nn.sigmoid(gi[:, 0:HID] + gh[:, 0:HID])
        z = jax.nn.sigmoid(gi[:, HID:2 * HID] + gh[:, HID:2 * HID])
        n = jnp.tanh(gi[:, 2 * HID:3 * HID] + r * gh[:, 2 * HID:3 * HID])
        h = (1.0 - z) * n + z * h
    q_emb = h                                                             # [8, HID]

    # ---------------- 2-stack StackedAttention over a single region (R == 1)
    # Fused entry matmul: [q_emb | v_emb] @ blockdiag(wq1, wv1|wv2) -> [qe1|ve1|ve2].
    # With R == 1 the softmax over regions is identically 1, so the weighted sum
    # equals ve and the (ATT,1) logit projection + tanh have no effect on u.
    qv = jnp.concatenate([q_emb, v_emb], axis=1)                          # [8, HID+V_DIM]
    qvw = jnp.dot(qv, wqv, preferred_element_type=jnp.float32)            # [8, 3*ATT]
    qe1 = qvw[:, 0:ATT] + bq1
    ve1 = qvw[:, ATT:2 * ATT]
    ve2 = qvw[:, 2 * ATT:3 * ATT]
    u1 = qe1 + ve1
    u2 = jnp.dot(u1, wq2, preferred_element_type=jnp.float32) + bq2 + ve2 # [8, ATT]

    # epilogue: zero-fill the (8,128) tile, then a single sliced store (no lane concat)
    out_ref[...] = jnp.zeros((ROWS, OUT_LANES), jnp.float32)
    out_ref[:, 0:ATT] = u2


# --------------------------------- glue --------------------------------------
def im2col(x):
    """x: [B, C, H, W] -> [B, Ho*Wo, C*KH*KW] (channel-major, then kh, kw)."""
    xp = jnp.pad(x, ((0, 0), (0, 0), (PAD, PAD), (PAD, PAD)))
    b, c, hp, wp = xp.shape
    ho = (hp - KH) // STRIDE + 1
    wo = (wp - KW) // STRIDE + 1
    cols = []
    for i in range(KH):
        for j in range(KW):
            cols.append(xp[:, :, i:i + STRIDE * ho:STRIDE, j:j + STRIDE * wo:STRIDE])
    patches = jnp.stack(cols, axis=2)                       # [B, C, KH*KW, Ho, Wo]
    patches = patches.transpose(0, 3, 4, 1, 2).reshape(b, ho * wo, c * KH * KW)
    return patches


def im2col_for_kernel(x):
    """[B,C,H,W] -> [B*R, K_PAD] with a ones column at K_PATCH (conv-bias fold)."""
    patches = im2col(x).reshape(B * R_IMG, K_PATCH)
    ones = jnp.ones((B * R_IMG, 1), jnp.float32)
    zeros = jnp.zeros((B * R_IMG, K_PAD - K_PATCH - 1), jnp.float32)
    return jnp.concatenate([patches, ones, zeros], axis=1)


def init_params(key):
    ks = jax.random.split(key, 20)
    s = 0.1
    p = {}
    p["emb"] = jax.random.normal(ks[0], (VOCAB, EMB), jnp.float32) * s
    p["conv_w"] = jax.random.normal(ks[1], (K_PATCH, CONV_C), jnp.float32) * s
    p["conv_b"] = jax.random.normal(ks[2], (CONV_C,), jnp.float32) * s
    p["proj_w"] = jax.random.normal(ks[3], (CONV_C, V_DIM), jnp.float32) * s
    p["proj_b"] = jax.random.normal(ks[4], (V_DIM,), jnp.float32) * s
    p["gru_wx"] = jax.random.normal(ks[5], (EMB, 3 * HID), jnp.float32) * s
    p["gru_wh"] = jax.random.normal(ks[6], (HID, 3 * HID), jnp.float32) * s
    p["gru_bx"] = jax.random.normal(ks[7], (3 * HID,), jnp.float32) * s
    p["gru_bh"] = jax.random.normal(ks[8], (3 * HID,), jnp.float32) * s
    p["wq1"] = jax.random.normal(ks[9], (HID, ATT), jnp.float32) * s
    p["bq1"] = jax.random.normal(ks[10], (ATT,), jnp.float32) * s
    p["wv1"] = jax.random.normal(ks[11], (V_DIM, ATT), jnp.float32) * s
    p["wp1"] = jax.random.normal(ks[12], (ATT, 1), jnp.float32) * s
    p["bp1"] = jax.random.normal(ks[13], (1,), jnp.float32) * s
    p["wq2"] = jax.random.normal(ks[14], (ATT, ATT), jnp.float32) * s
    p["bq2"] = jax.random.normal(ks[15], (ATT,), jnp.float32) * s
    p["wv2"] = jax.random.normal(ks[16], (V_DIM, ATT), jnp.float32) * s
    p["wp2"] = jax.random.normal(ks[17], (ATT, 1), jnp.float32) * s
    p["bp2"] = jax.random.normal(ks[18], (1,), jnp.float32) * s
    return p


def prepare_kernel_params(p):
    """Pack / fuse parameters into the 2 slabs the fused kernel consumes."""
    # conv weights with the bias folded into row 27 (matches the ones column)
    conv_w_aug = jnp.zeros((K_PAD, CONV_C), jnp.float32)
    conv_w_aug = conv_w_aug.at[:K_PATCH].set(p["conv_w"])
    conv_w_aug = conv_w_aug.at[K_PATCH].set(p["conv_b"])

    # block-diagonal attention-entry weight: [q | v] @ blockdiag(wq1, wv1|wv2)
    wqv = jnp.zeros((HID + V_DIM, 3 * ATT), jnp.float32)
    wqv = wqv.at[0:HID, 0:ATT].set(p["wq1"])
    wqv = wqv.at[HID:HID + V_DIM, ATT:3 * ATT].set(
        jnp.concatenate([p["wv1"], p["wv2"]], axis=1))

    # single lane-dense weight slab, every matrix at an 8-sublane-aligned row
    w_slab = jnp.zeros((W_ROWS, 128), jnp.float32)
    w_slab = w_slab.at[W_CONV:W_CONV + K_PAD, 0:CONV_C].set(conv_w_aug)
    w_slab = w_slab.at[W_PROJ:W_PROJ + CONV_C, 0:V_DIM].set(p["proj_w"])
    w_slab = w_slab.at[W_WX:W_WX + EMB, 0:3 * HID].set(p["gru_wx"])
    w_slab = w_slab.at[W_WH:W_WH + HID, 0:3 * HID].set(p["gru_wh"])
    w_slab = w_slab.at[W_QV:W_QV + HID + V_DIM, 0:3 * ATT].set(wqv)
    w_slab = w_slab.at[W_Q2:W_Q2 + ATT, 0:ATT].set(p["wq2"])

    # constant slab: biases (rows 0..4) + precomputed GAP pooling matrix (rows 8..15)
    const = jnp.zeros((C_ROWS, 128), jnp.float32)
    const = const.at[0, :V_DIM].set(p["proj_b"])
    const = const.at[1, :3 * HID].set(p["gru_bx"])
    const = const.at[2, :3 * HID].set(p["gru_bh"])
    const = const.at[3, :ATT].set(p["bq1"])
    const = const.at[4, :ATT].set(p["bq2"])
    pool = jnp.where(
        jnp.arange(ROWS)[:, None] == (jnp.arange(B * R_IMG)[None, :] // R_IMG),
        1.0 / R_IMG, 0.0).astype(jnp.float32)                   # rows >= B are all zero
    const = const.at[8:16, 0:B * R_IMG].set(pool)

    return {"w_slab": w_slab, "const": const}
    # wp1/bp1/wp2/bp2 provably have no effect when N_REGIONS == 1 (softmax == 1)


@jax.jit
def san_forward(p, kp, v, q):
    """v: [B, num_objs, C, H, W] f32 ; q: [B, S] int32 tokens -> att [B, ATT]."""
    v_img = v[:, 0]                                           # v.squeeze(1)
    patches = im2col_for_kernel(v_img)                        # [B*R, K_PAD]   (glue)
    w_emb = jnp.take(p["emb"], q, axis=0)                     # [B, S, EMB]    (gather glue)
    # time-major, 8-sublane-aligned timesteps: row t*8 + b (rows B..7 per step are zero)
    x_seq = jnp.pad(jnp.transpose(w_emb, (1, 0, 2)),
                    ((0, 0), (0, ROWS - B), (0, 0))).reshape(SEQ * ROWS, EMB)

    out = pl.pallas_call(
        san_fused_kernel,
        out_shape=jax.ShapeDtypeStruct((ROWS, OUT_LANES), jnp.float32),
        in_specs=[_vmem(), _vmem(), _vmem(), _vmem()],
        out_specs=_vmem(),
        compiler_params=pltpu.CompilerParams(
            # let XLA fuse the im2col / embedding glue directly into the call inputs
            allow_input_fusion=[True, True, False, False]),
    )(patches, x_seq, kp["w_slab"], kp["const"])
    # NOTE(v7x): grid=() runs on a single TensorCore; at B=2 that is fine. If batch
    # scales, add a leading "parallel" grid axis over batch tiles to use both TCs.
    return out[:B, :ATT]


# ----------------------- pure-JAX reference (full math) ----------------------
def san_reference(p, v, q):
    v_img = v[:, 0]
    patches = im2col(v_img)                                   # [B, R, K_PATCH]
    feat = jnp.maximum(
        jnp.einsum("brk,kc->brc", patches, p["conv_w"]) + p["conv_b"], 0.0)
    pooled = jnp.mean(feat, axis=1)
    v_emb = jnp.maximum(pooled @ p["proj_w"] + p["proj_b"], 0.0)

    w_emb = jnp.take(p["emb"], q, axis=0)
    h = jnp.zeros((B, HID), jnp.float32)
    for t in range(SEQ):
        x_t = w_emb[:, t, :]
        gi = x_t @ p["gru_wx"] + p["gru_bx"]
        gh = h @ p["gru_wh"] + p["gru_bh"]
        r = jax.nn.sigmoid(gi[:, 0:HID] + gh[:, 0:HID])
        z = jax.nn.sigmoid(gi[:, HID:2 * HID] + gh[:, HID:2 * HID])
        n = jnp.tanh(gi[:, 2 * HID:3 * HID] + r * gh[:, 2 * HID:3 * HID])
        h = (1.0 - z) * n + z * h
    q_emb = h

    v_reg = v_emb[:, None, :]                                 # [B, 1, V_DIM]

    def one_stack(ques, wq, bq, wv, wp, bp):
        qe = ques @ wq + bq
        ve = jnp.einsum("brv,va->bra", v_reg, wv)
        hh = jnp.tanh(qe[:, None, :] + ve)
        logits = jnp.einsum("bra,ao->bro", hh, wp)[..., 0] + bp
        p_att = jax.nn.softmax(logits, axis=1)
        ws = jnp.sum(ve * p_att[:, :, None], axis=1)
        return qe + ws

    u1 = one_stack(q_emb, p["wq1"], p["bq1"], p["wv1"], p["wp1"], p["bp1"])
    u2 = one_stack(u1, p["wq2"], p["bq2"], p["wv2"], p["wp2"], p["bp2"])
    return u2


# ----------------------------------- main ------------------------------------
if __name__ == "__main__":
    key = jax.random.PRNGKey(0)
    kv, kq, kparam = jax.random.split(key, 3)
    v = jax.random.normal(kv, (B, NUM_OBJS, C_IN, IMG, IMG), jnp.float32)
    q = jax.random.randint(kq, (B, SEQ), 0, VOCAB, jnp.int32)
    params = init_params(kparam)
    kparams = prepare_kernel_params(params)

    att = jax.block_until_ready(san_forward(params, kparams, v, q))
    ref = jax.block_until_ready(san_reference(params, v, q))

    assert att.shape == (B, ATT), att.shape
    assert bool(jnp.all(jnp.isfinite(att)))
    max_err = float(jnp.max(jnp.abs(att - ref)))
    assert max_err < 1e-2, f"max abs err vs reference: {max_err}"
    print("KERNEL_OK")
</pallas_src>

<mosaic_0001>
module attributes {stable_mosaic.version = 11 : i64} {
  func.func @san_fused_kernel(%arg0: memref<128x32xf32, #tpu.memory_space<vmem>>, %arg1: memref<64x16xf32, #tpu.memory_space<vmem>>, %arg2: memref<192x128xf32, #tpu.memory_space<vmem>>, %arg3: memref<16x128xf32, #tpu.memory_space<vmem>>, %arg4: memref<8x128xf32, #tpu.memory_space<vmem>>) attributes {dimension_semantics = [], scalar_prefetch = 0 : i64, scratch_operands = 0 : i64, tpu.core_type = #tpu.core_type<tc>} {
    %c0 = arith.constant 0 : index
    %c0_0 = arith.constant 0 : index
    %0 = vector.load %arg2[%c0, %c0_0] : memref<192x128xf32, #tpu.memory_space<vmem>>, vector<32x16xf32>
    %c32 = arith.constant 32 : index
    %c0_1 = arith.constant 0 : index
    %1 = vector.load %arg2[%c32, %c0_1] : memref<192x128xf32, #tpu.memory_space<vmem>>, vector<16x32xf32>
    %c48 = arith.constant 48 : index
    %c0_2 = arith.constant 0 : index
    %2 = vector.load %arg2[%c48, %c0_2] : memref<192x128xf32, #tpu.memory_space<vmem>>, vector<16x96xf32>
    %c64 = arith.constant 64 : index
    %c0_3 = arith.constant 0 : index
    %3 = vector.load %arg2[%c64, %c0_3] : memref<192x128xf32, #tpu.memory_space<vmem>>, vector<32x96xf32>
    %c96 = arith.constant 96 : index
    %c0_4 = arith.constant 0 : index
    %4 = vector.load %arg2[%c96, %c0_4] : memref<192x128xf32, #tpu.memory_space<vmem>>, vector<64x96xf32>
    %c160 = arith.constant 160 : index
    %c0_5 = arith.constant 0 : index
    %5 = vector.load %arg2[%c160, %c0_5] : memref<192x128xf32, #tpu.memory_space<vmem>>, vector<32x32xf32>
    %c0_6 = arith.constant 0 : index
    %c0_7 = arith.constant 0 : index
    %6 = vector.load %arg3[%c0_6, %c0_7] : memref<16x128xf32, #tpu.memory_space<vmem>>, vector<1x32xf32>
    %c1 = arith.constant 1 : index
    %c0_8 = arith.constant 0 : index
    %7 = vector.load %arg3[%c1, %c0_8] : memref<16x128xf32, #tpu.memory_space<vmem>>, vector<1x96xf32>
    %c2 = arith.constant 2 : index
    %c0_9 = arith.constant 0 : index
    %8 = vector.load %arg3[%c2, %c0_9] : memref<16x128xf32, #tpu.memory_space<vmem>>, vector<1x96xf32>
    %c3 = arith.constant 3 : index
    %c0_10 = arith.constant 0 : index
    %9 = vector.load %arg3[%c3, %c0_10] : memref<16x128xf32, #tpu.memory_space<vmem>>, vector<1x32xf32>
    %c4 = arith.constant 4 : index
    %c0_11 = arith.constant 0 : index
    %10 = vector.load %arg3[%c4, %c0_11] : memref<16x128xf32, #tpu.memory_space<vmem>>, vector<1x32xf32>
    %c8 = arith.constant 8 : index
    %c0_12 = arith.constant 0 : index
    %11 = vector.load %arg3[%c8, %c0_12] : memref<16x128xf32, #tpu.memory_space<vmem>>, vector<8x128xf32>
    %c0_13 = arith.constant 0 : index
    %c0_14 = arith.constant 0 : index
    %12 = vector.load %arg0[%c0_13, %c0_14] : memref<128x32xf32, #tpu.memory_space<vmem>>, vector<128x32xf32>
    %cst = arith.constant dense<0.000000e+00> : vector<128x16xf32>
    %13 = tpu.matmul %12, %0, %cst {dimension_numbers = #tpu.dot_dimension_numbers<[1], [0], [0], [1], [0, 0, 1, 1], [], []>} : vector<128x32xf32>, vector<32x16xf32>, vector<128x16xf32> -> vector<128x16xf32>
    %cst_15 = arith.constant 0.000000e+00 : f32
    %14 = vector.broadcast %cst_15 : f32 to vector<128x16xf32>
    %15 = arith.maximumf %13, %14 : vector<128x16xf32>
    %cst_16 = arith.constant dense<0.000000e+00> : vector<8x16xf32>
    %16 = tpu.matmul %11, %15, %cst_16 {dimension_numbers = #tpu.dot_dimension_numbers<[1], [0], [0], [1], [0, 0, 1, 1], [], []>} : vector<8x128xf32>, vector<128x16xf32>, vector<8x16xf32> -> vector<8x16xf32>
    %cst_17 = arith.constant dense<0.000000e+00> : vector<8x32xf32>
    %17 = tpu.matmul %16, %1, %cst_17 {dimension_numbers = #tpu.dot_dimension_numbers<[1], [0], [0], [1], [0, 0, 1, 1], [], []>} : vector<8x16xf32>, vector<16x32xf32>, vector<8x32xf32> -> vector<8x32xf32>
    %18 = vector.broadcast %6 : vector<1x32xf32> to vector<8x32xf32>
    %19 = arith.addf %17, %18 : vector<8x32xf32>
    %cst_18 = arith.constant 0.000000e+00 : f32
    %20 = vector.broadcast %cst_18 : f32 to vector<8x32xf32>
    %21 = arith.maximumf %19, %20 : vector<8x32xf32>
    %c0_19 = arith.constant 0 : index
    %c0_20 = arith.constant 0 : index
    %22 = vector.load %arg1[%c0_19, %c0_20] : memref<64x16xf32, #tpu.memory_space<vmem>>, vector<64x16xf32>
    %cst_21 = arith.constant dense<0.000000e+00> : vector<64x96xf32>
    %23 = tpu.matmul %22, %2, %cst_21 {dimension_numbers = #tpu.dot_dimension_numbers<[1], [0], [0], [1], [0, 0, 1, 1], [], []>} : vector<64x16xf32>, vector<16x96xf32>, vector<64x96xf32> -> vector<64x96xf32>
    %24 = vector.broadcast %7 : vector<1x96xf32> to vector<64x96xf32>
    %25 = arith.addf %23, %24 : vector<64x96xf32>
    %26 = vector.shape_cast %8 : vector<1x96xf32> to vector<1x96xf32>
    %27 = vector.broadcast %26 : vector<1x96xf32> to vector<8x96xf32>
    %cst_22 = arith.constant 0.000000e+00 : f32
    %28 = vector.broadcast %cst_22 : f32 to vector<8x32xf32>
    %29 = vector.extract_strided_slice %25 {offsets = [0, 0], sizes = [8, 96], strides = [1, 1]} : vector<64x96xf32> to vector<8x96xf32>
    %cst_23 = arith.constant dense<0.000000e+00> : vector<8x96xf32>
    %30 = tpu.matmul %28, %3, %cst_23 {dimension_numbers = #tpu.dot_dimension_numbers<[1], [0], [0], [1], [0, 0, 1, 1], [], []>} : vector<8x32xf32>, vector<32x96xf32>, vector<8x96xf32> -> vector<8x96xf32>
    %31 = arith.addf %30, %27 : vector<8x96xf32>
    %32 = vector.extract_strided_slice %29 {offsets = [0, 0], sizes = [8, 32], strides = [1, 1]} : vector<8x96xf32> to vector<8x32xf32>
    %33 = vector.extract_strided_slice %31 {offsets = [0, 0], sizes = [8, 32], strides = [1, 1]} : vector<8x96xf32> to vector<8x32xf32>
    %34 = arith.addf %32, %33 : vector<8x32xf32>
    %35 = arith.negf %34 : vector<8x32xf32>
    %36 = math.exp %35 : vector<8x32xf32>
    %cst_24 = arith.constant 1.000000e+00 : f32
    %37 = vector.broadcast %cst_24 : f32 to vector<8x32xf32>
    %38 = arith.addf %37, %36 : vector<8x32xf32>
    %39 = arith.divf %37, %38 : vector<8x32xf32>
    %40 = vector.extract_strided_slice %29 {offsets = [0, 32], sizes = [8, 32], strides = [1, 1]} : vector<8x96xf32> to vector<8x32xf32>
    %41 = vector.extract_strided_slice %31 {offsets = [0, 32], sizes = [8, 32], strides = [1, 1]} : vector<8x96xf32> to vector<8x32xf32>
    %42 = arith.addf %40, %41 : vector<8x32xf32>
    %43 = arith.negf %42 : vector<8x32xf32>
    %44 = math.exp %43 : vector<8x32xf32>
    %cst_25 = arith.constant 1.000000e+00 : f32
    %45 = vector.broadcast %cst_25 : f32 to vector<8x32xf32>
    %46 = arith.addf %45, %44 : vector<8x32xf32>
    %47 = arith.divf %45, %46 : vector<8x32xf32>
    %48 = vector.extract_strided_slice %29 {offsets = [0, 64], sizes = [8, 32], strides = [1, 1]} : vector<8x96xf32> to vector<8x32xf32>
    %49 = vector.extract_strided_slice %31 {offsets = [0, 64], sizes = [8, 32], strides = [1, 1]} : vector<8x96xf32> to vector<8x32xf32>
    %50 = arith.mulf %39, %49 : vector<8x32xf32>
    %51 = arith.addf %48, %50 : vector<8x32xf32>
    %52 = math.tanh %51 : vector<8x32xf32>
    %cst_26 = arith.constant 1.000000e+00 : f32
    %53 = vector.broadcast %cst_26 : f32 to vector<8x32xf32>
    %54 = arith.subf %53, %47 : vector<8x32xf32>
    %55 = arith.mulf %54, %52 : vector<8x32xf32>
    %56 = arith.mulf %47, %28 : vector<8x32xf32>
    %57 = arith.addf %55, %56 : vector<8x32xf32>
    %58 = vector.extract_strided_slice %25 {offsets = [8, 0], sizes = [8, 96], strides = [1, 1]} : vector<64x96xf32> to vector<8x96xf32>
    %cst_27 = arith.constant dense<0.000000e+00> : vector<8x96xf32>
    %59 = tpu.matmul %57, %3, %cst_27 {dimension_numbers = #tpu.dot_dimension_numbers<[1], [0], [0], [1], [0, 0, 1, 1], [], []>} : vector<8x32xf32>, vector<32x96xf32>, vector<8x96xf32> -> vector<8x96xf32>
    %60 = arith.addf %59, %27 : vector<8x96xf32>
    %61 = vector.extract_strided_slice %58 {offsets = [0, 0], sizes = [8, 32], strides = [1, 1]} : vector<8x96xf32> to vector<8x32xf32>
    %62 = vector.extract_strided_slice %60 {offsets = [0, 0], sizes = [8, 32], strides = [1, 1]} : vector<8x96xf32> to vector<8x32xf32>
    %63 = arith.addf %61, %62 : vector<8x32xf32>
    %64 = arith.negf %63 : vector<8x32xf32>
    %65 = math.exp %64 : vector<8x32xf32>
    %cst_28 = arith.constant 1.000000e+00 : f32
    %66 = vector.broadcast %cst_28 : f32 to vector<8x32xf32>
    %67 = arith.addf %66, %65 : vector<8x32xf32>
    %68 = arith.divf %66, %67 : vector<8x32xf32>
    %69 = vector.extract_strided_slice %58 {offsets = [0, 32], sizes = [8, 32], strides = [1, 1]} : vector<8x96xf32> to vector<8x32xf32>
    %70 = vector.extract_strided_slice %60 {offsets = [0, 32], sizes = [8, 32], strides = [1, 1]} : vector<8x96xf32> to vector<8x32xf32>
    %71 = arith.addf %69, %70 : vector<8x32xf32>
    %72 = arith.negf %71 : vector<8x32xf32>
    %73 = math.exp %72 : vector<8x32xf32>
    %cst_29 = arith.constant 1.000000e+00 : f32
    %74 = vector.broadcast %cst_29 : f32 to vector<8x32xf32>
    %75 = arith.addf %74, %73 : vector<8x32xf32>
    %76 = arith.divf %74, %75 : vector<8x32xf32>
    %77 = vector.extract_strided_slice %58 {offsets = [0, 64], sizes = [8, 32], strides = [1, 1]} : vector<8x96xf32> to vector<8x32xf32>
    %78 = vector.extract_strided_slice %60 {offsets = [0, 64], sizes = [8, 32], strides = [1, 1]} : vector<8x96xf32> to vector<8x32xf32>
    %79 = arith.mulf %68, %78 : vector<8x32xf32>
    %80 = arith.addf %77, %79 : vector<8x32xf32>
    %81 = math.tanh %80 : vector<8x32xf32>
    %cst_30 = arith.constant 1.000000e+00 : f32
    %82 = vector.broadcast %cst_30 : f32 to vector<8x32xf32>
    %83 = arith.subf %82, %76 : vector<8x32xf32>
    %84 = arith.mulf %83, %81 : vector<8x32xf32>
    %85 = arith.mulf %76, %57 : vector<8x32xf32>
    %86 = arith.addf %84, %85 : vector<8x32xf32>
    %87 = vector.extract_strided_slice %25 {offsets = [16, 0], sizes = [8, 96], strides = [1, 1]} : vector<64x96xf32> to vector<8x96xf32>
    %cst_31 = arith.constant dense<0.000000e+00> : vector<8x96xf32>
    %88 = tpu.matmul %86, %3, %cst_31 {dimension_numbers = #tpu.dot_dimension_numbers<[1], [0], [0], [1], [0, 0, 1, 1], [], []>} : vector<8x32xf32>, vector<32x96xf32>, vector<8x96xf32> -> vector<8x96xf32>
    %89 = arith.addf %88, %27 : vector<8x96xf32>
    %90 = vector.extract_strided_slice %87 {offsets = [0, 0], sizes = [8, 32], strides = [1, 1]} : vector<8x96xf32> to vector<8x32xf32>
    %91 = vector.extract_strided_slice %89 {offsets = [0, 0], sizes = [8, 32], strides = [1, 1]} : vector<8x96xf32> to vector<8x32xf32>
    %92 = arith.addf %90, %91 : vector<8x32xf32>
    %93 = arith.negf %92 : vector<8x32xf32>
    %94 = math.exp %93 : vector<8x32xf32>
    %cst_32 = arith.constant 1.000000e+00 : f32
    %95 = vector.broadcast %cst_32 : f32 to vector<8x32xf32>
    %96 = arith.addf %95, %94 : vector<8x32xf32>
    %97 = arith.divf %95, %96 : vector<8x32xf32>
    %98 = vector.extract_strided_slice %87 {offsets = [0, 32], sizes = [8, 32], strides = [1, 1]} : vector<8x96xf32> to vector<8x32xf32>
    %99 = vector.extract_strided_slice %89 {offsets = [0, 32], sizes = [8, 32], strides = [1, 1]} : vector<8x96xf32> to vector<8x32xf32>
    %100 = arith.addf %98, %99 : vector<8x32xf32>
    %101 = arith.negf %100 : vector<8x32xf32>
    %102 = math.exp %101 : vector<8x32xf32>
    %cst_33 = arith.constant 1.000000e+00 : f32
    %103 = vector.broadcast %cst_33 : f32 to vector<8x32xf32>
    %104 = arith.addf %103, %102 : vector<8x32xf32>
    %105 = arith.divf %103, %104 : vector<8x32xf32>
    %106 = vector.extract_strided_slice %87 {offsets = [0, 64], sizes = [8, 32], strides = [1, 1]} : vector<8x96xf32> to vector<8x32xf32>
    %107 = vector.extract_strided_slice %89 {offsets = [0, 64], sizes = [8, 32], strides = [1, 1]} : vector<8x96xf32> to vector<8x32xf32>
    %108 = arith.mulf %97, %107 : vector<8x32xf32>
    %109 = arith.addf %106, %108 : vector<8x32xf32>
    %110 = math.tanh %109 : vector<8x32xf32>
    %cst_34 = arith.constant 1.000000e+00 : f32
    %111 = vector.broadcast %cst_34 : f32 to vector<8x32xf32>
    %112 = arith.subf %111, %105 : vector<8x32xf32>
    %113 = arith.mulf %112, %110 : vector<8x32xf32>
    %114 = arith.mulf %105, %86 : vector<8x32xf32>
    %115 = arith.addf %113, %114 : vector<8x32xf32>
    %116 = vector.extract_strided_slice %25 {offsets = [24, 0], sizes = [8, 96], strides = [1, 1]} : vector<64x96xf32> to vector<8x96xf32>
    %cst_35 = arith.constant dense<0.000000e+00> : vector<8x96xf32>
    %117 = tpu.matmul %115, %3, %cst_35 {dimension_numbers = #tpu.dot_dimension_numbers<[1], [0], [0], [1], [0, 0, 1, 1], [], []>} : vector<8x32xf32>, vector<32x96xf32>, vector<8x96xf32> -> vector<8x96xf32>
    %118 = arith.addf %117, %27 : vector<8x96xf32>
    %119 = vector.extract_strided_slice %116 {offsets = [0, 0], sizes = [8, 32], strides = [1, 1]} : vector<8x96xf32> to vector<8x32xf32>
    %120 = vector.extract_strided_slice %118 {offsets = [0, 0], sizes = [8, 32], strides = [1, 1]} : vector<8x96xf32> to vector<8x32xf32>
    %121 = arith.addf %119, %120 : vector<8x32xf32>
    %122 = arith.negf %121 : vector<8x32xf32>
    %123 = math.exp %122 : vector<8x32xf32>
    %cst_36 = arith.constant 1.000000e+00 : f32
    %124 = vector.broadcast %cst_36 : f32 to vector<8x32xf32>
    %125 = arith.addf %124, %123 : vector<8x32xf32>
    %126 = arith.divf %124, %125 : vector<8x32xf32>
    %127 = vector.extract_strided_slice %116 {offsets = [0, 32], sizes = [8, 32], strides = [1, 1]} : vector<8x96xf32> to vector<8x32xf32>
    %128 = vector.extract_strided_slice %118 {offsets = [0, 32], sizes = [8, 32], strides = [1, 1]} : vector<8x96xf32> to vector<8x32xf32>
    %129 = arith.addf %127, %128 : vector<8x32xf32>
    %130 = arith.negf %129 : vector<8x32xf32>
    %131 = math.exp %130 : vector<8x32xf32>
    %cst_37 = arith.constant 1.000000e+00 : f32
    %132 = vector.broadcast %cst_37 : f32 to vector<8x32xf32>
    %133 = arith.addf %132, %131 : vector<8x32xf32>
    %134 = arith.divf %132, %133 : vector<8x32xf32>
    %135 = vector.extract_strided_slice %116 {offsets = [0, 64], sizes = [8, 32], strides = [1, 1]} : vector<8x96xf32> to vector<8x32xf32>
    %136 = vector.extract_strided_slice %118 {offsets = [0, 64], sizes = [8, 32], strides = [1, 1]} : vector<8x96xf32> to vector<8x32xf32>
    %137 = arith.mulf %126, %136 : vector<8x32xf32>
    %138 = arith.addf %135, %137 : vector<8x32xf32>
    %139 = math.tanh %138 : vector<8x32xf32>
    %cst_38 = arith.constant 1.000000e+00 : f32
    %140 = vector.broadcast %cst_38 : f32 to vector<8x32xf32>
    %141 = arith.subf %140, %134 : vector<8x32xf32>
    %142 = arith.mulf %141, %139 : vector<8x32xf32>
    %143 = arith.mulf %134, %115 : vector<8x32xf32>
    %144 = arith.addf %142, %143 : vector<8x32xf32>
    %145 = vector.extract_strided_slice %25 {offsets = [32, 0], sizes = [8, 96], strides = [1, 1]} : vector<64x96xf32> to vector<8x96xf32>
    %cst_39 = arith.constant dense<0.000000e+00> : vector<8x96xf32>
    %146 = tpu.matmul %144, %3, %cst_39 {dimension_numbers = #tpu.dot_dimension_numbers<[1], [0], [0], [1], [0, 0, 1, 1], [], []>} : vector<8x32xf32>, vector<32x96xf32>, vector<8x96xf32> -> vector<8x96xf32>
    %147 = arith.addf %146, %27 : vector<8x96xf32>
    %148 = vector.extract_strided_slice %145 {offsets = [0, 0], sizes = [8, 32], strides = [1, 1]} : vector<8x96xf32> to vector<8x32xf32>
    %149 = vector.extract_strided_slice %147 {offsets = [0, 0], sizes = [8, 32], strides = [1, 1]} : vector<8x96xf32> to vector<8x32xf32>
    %150 = arith.addf %148, %149 : vector<8x32xf32>
    %151 = arith.negf %150 : vector<8x32xf32>
    %152 = math.exp %151 : vector<8x32xf32>
    %cst_40 = arith.constant 1.000000e+00 : f32
    %153 = vector.broadcast %cst_40 : f32 to vector<8x32xf32>
    %154 = arith.addf %153, %152 : vector<8x32xf32>
    %155 = arith.divf %153, %154 : vector<8x32xf32>
    %156 = vector.extract_strided_slice %145 {offsets = [0, 32], sizes = [8, 32], strides = [1, 1]} : vector<8x96xf32> to vector<8x32xf32>
    %157 = vector.extract_strided_slice %147 {offsets = [0, 32], sizes = [8, 32], strides = [1, 1]} : vector<8x96xf32> to vector<8x32xf32>
    %158 = arith.addf %156, %157 : vector<8x32xf32>
    %159 = arith.negf %158 : vector<8x32xf32>
    %160 = math.exp %159 : vector<8x32xf32>
    %cst_41 = arith.constant 1.000000e+00 : f32
    %161 = vector.broadcast %cst_41 : f32 to vector<8x32xf32>
    %162 = arith.addf %161, %160 : vector<8x32xf32>
    %163 = arith.divf %161, %162 : vector<8x32xf32>
    %164 = vector.extract_strided_slice %145 {offsets = [0, 64], sizes = [8, 32], strides = [1, 1]} : vector<8x96xf32> to vector<8x32xf32>
    %165 = vector.extract_strided_slice %147 {offsets = [0, 64], sizes = [8, 32], strides = [1, 1]} : vector<8x96xf32> to vector<8x32xf32>
    %166 = arith.mulf %155, %165 : vector<8x32xf32>
    %167 = arith.addf %164, %166 : vector<8x32xf32>
    %168 = math.tanh %167 : vector<8x32xf32>
    %cst_42 = arith.constant 1.000000e+00 : f32
    %169 = vector.broadcast %cst_42 : f32 to vector<8x32xf32>
    %170 = arith.subf %169, %163 : vector<8x32xf32>
    %171 = arith.mulf %170, %168 : vector<8x32xf32>
    %172 = arith.mulf %163, %144 : vector<8x32xf32>
    %173 = arith.addf %171, %172 : vector<8x32xf32>
    %174 = vector.extract_strided_slice %25 {offsets = [40, 0], sizes = [8, 96], strides = [1, 1]} : vector<64x96xf32> to vector<8x96xf32>
    %cst_43 = arith.constant dense<0.000000e+00> : vector<8x96xf32>
    %175 = tpu.matmul %173, %3, %cst_43 {dimension_numbers = #tpu.dot_dimension_numbers<[1], [0], [0], [1], [0, 0, 1, 1], [], []>} : vector<8x32xf32>, vector<32x96xf32>, vector<8x96xf32> -> vector<8x96xf32>
    %176 = arith.addf %175, %27 : vector<8x96xf32>
    %177 = vector.extract_strided_slice %174 {offsets = [0, 0], sizes = [8, 32], strides = [1, 1]} : vector<8x96xf32> to vector<8x32xf32>
    %178 = vector.extract_strided_slice %176 {offsets = [0, 0], sizes = [8, 32], strides = [1, 1]} : vector<8x96xf32> to vector<8x32xf32>
    %179 = arith.addf %177, %178 : vector<8x32xf32>
    %180 = arith.negf %179 : vector<8x32xf32>
    %181 = math.exp %180 : vector<8x32xf32>
    %cst_44 = arith.constant 1.000000e+00 : f32
    %182 = vector.broadcast %cst_44 : f32 to vector<8x32xf32>
    %183 = arith.addf %182, %181 : vector<8x32xf32>
    %184 = arith.divf %182, %183 : vector<8x32xf32>
    %185 = vector.extract_strided_slice %174 {offsets = [0, 32], sizes = [8, 32], strides = [1, 1]} : vector<8x96xf32> to vector<8x32xf32>
    %186 = vector.extract_strided_slice %176 {offsets = [0, 32], sizes = [8, 32], strides = [1, 1]} : vector<8x96xf32> to vector<8x32xf32>
    %187 = arith.addf %185, %186 : vector<8x32xf32>
    %188 = arith.negf %187 : vector<8x32xf32>
    %189 = math.exp %188 : vector<8x32xf32>
    %cst_45 = arith.constant 1.000000e+00 : f32
    %190 = vector.broadcast %cst_45 : f32 to vector<8x32xf32>
    %191 = arith.addf %190, %189 : vector<8x32xf32>
    %192 = arith.divf %190, %191 : vector<8x32xf32>
    %193 = vector.extract_strided_slice %174 {offsets = [0, 64], sizes = [8, 32], strides = [1, 1]} : vector<8x96xf32> to vector<8x32xf32>
    %194 = vector.extract_strided_slice %176 {offsets = [0, 64], sizes = [8, 32], strides = [1, 1]} : vector<8x96xf32> to vector<8x32xf32>
    %195 = arith.mulf %184, %194 : vector<8x32xf32>
    %196 = arith.addf %193, %195 : vector<8x32xf32>
    %197 = math.tanh %196 : vector<8x32xf32>
    %cst_46 = arith.constant 1.000000e+00 : f32
    %198 = vector.broadcast %cst_46 : f32 to vector<8x32xf32>
    %199 = arith.subf %198, %192 : vector<8x32xf32>
    %200 = arith.mulf %199, %197 : vector<8x32xf32>
    %201 = arith.mulf %192, %173 : vector<8x32xf32>
    %202 = arith.addf %200, %201 : vector<8x32xf32>
    %203 = vector.extract_strided_slice %25 {offsets = [48, 0], sizes = [8, 96], strides = [1, 1]} : vector<64x96xf32> to vector<8x96xf32>
    %cst_47 = arith.constant dense<0.000000e+00> : vector<8x96xf32>
    %204 = tpu.matmul %202, %3, %cst_47 {dimension_numbers = #tpu.dot_dimension_numbers<[1], [0], [0], [1], [0, 0, 1, 1], [], []>} : vector<8x32xf32>, vector<32x96xf32>, vector<8x96xf32> -> vector<8x96xf32>
    %205 = arith.addf %204, %27 : vector<8x96xf32>
    %206 = vector.extract_strided_slice %203 {offsets = [0, 0], sizes = [8, 32], strides = [1, 1]} : vector<8x96xf32> to vector<8x32xf32>
    %207 = vector.extract_strided_slice %205 {offsets = [0, 0], sizes = [8, 32], strides = [1, 1]} : vector<8x96xf32> to vector<8x32xf32>
    %208 = arith.addf %206, %207 : vector<8x32xf32>
    %209 = arith.negf %208 : vector<8x32xf32>
    %210 = math.exp %209 : vector<8x32xf32>
    %cst_48 = arith.constant 1.000000e+00 : f32
    %211 = vector.broadcast %cst_48 : f32 to vector<8x32xf32>
    %212 = arith.addf %211, %210 : vector<8x32xf32>
    %213 = arith.divf %211, %212 : vector<8x32xf32>
    %214 = vector.extract_strided_slice %203 {offsets = [0, 32], sizes = [8, 32], strides = [1, 1]} : vector<8x96xf32> to vector<8x32xf32>
    %215 = vector.extract_strided_slice %205 {offsets = [0, 32], sizes = [8, 32], strides = [1, 1]} : vector<8x96xf32> to vector<8x32xf32>
    %216 = arith.addf %214, %215 : vector<8x32xf32>
    %217 = arith.negf %216 : vector<8x32xf32>
    %218 = math.exp %217 : vector<8x32xf32>
    %cst_49 = arith.constant 1.000000e+00 : f32
    %219 = vector.broadcast %cst_49 : f32 to vector<8x32xf32>
    %220 = arith.addf %219, %218 : vector<8x32xf32>
    %221 = arith.divf %219, %220 : vector<8x32xf32>
    %222 = vector.extract_strided_slice %203 {offsets = [0, 64], sizes = [8, 32], strides = [1, 1]} : vector<8x96xf32> to vector<8x32xf32>
    %223 = vector.extract_strided_slice %205 {offsets = [0, 64], sizes = [8, 32], strides = [1, 1]} : vector<8x96xf32> to vector<8x32xf32>
    %224 = arith.mulf %213, %223 : vector<8x32xf32>
    %225 = arith.addf %222, %224 : vector<8x32xf32>
    %226 = math.tanh %225 : vector<8x32xf32>
    %cst_50 = arith.constant 1.000000e+00 : f32
    %227 = vector.broadcast %cst_50 : f32 to vector<8x32xf32>
    %228 = arith.subf %227, %221 : vector<8x32xf32>
    %229 = arith.mulf %228, %226 : vector<8x32xf32>
    %230 = arith.mulf %221, %202 : vector<8x32xf32>
    %231 = arith.addf %229, %230 : vector<8x32xf32>
    %232 = vector.extract_strided_slice %25 {offsets = [56, 0], sizes = [8, 96], strides = [1, 1]} : vector<64x96xf32> to vector<8x96xf32>
    %cst_51 = arith.constant dense<0.000000e+00> : vector<8x96xf32>
    %233 = tpu.matmul %231, %3, %cst_51 {dimension_numbers = #tpu.dot_dimension_numbers<[1], [0], [0], [1], [0, 0, 1, 1], [], []>} : vector<8x32xf32>, vector<32x96xf32>, vector<8x96xf32> -> vector<8x96xf32>
    %234 = arith.addf %233, %27 : vector<8x96xf32>
    %235 = vector.extract_strided_slice %232 {offsets = [0, 0], sizes = [8, 32], strides = [1, 1]} : vector<8x96xf32> to vector<8x32xf32>
    %236 = vector.extract_strided_slice %234 {offsets = [0, 0], sizes = [8, 32], strides = [1, 1]} : vector<8x96xf32> to vector<8x32xf32>
    %237 = arith.addf %235, %236 : vector<8x32xf32>
    %238 = arith.negf %237 : vector<8x32xf32>
    %239 = math.exp %238 : vector<8x32xf32>
    %cst_52 = arith.constant 1.000000e+00 : f32
    %240 = vector.broadcast %cst_52 : f32 to vector<8x32xf32>
    %241 = arith.addf %240, %239 : vector<8x32xf32>
    %242 = arith.divf %240, %241 : vector<8x32xf32>
    %243 = vector.extract_strided_slice %232 {offsets = [0, 32], sizes = [8, 32], strides = [1, 1]} : vector<8x96xf32> to vector<8x32xf32>
    %244 = vector.extract_strided_slice %234 {offsets = [0, 32], sizes = [8, 32], strides = [1, 1]} : vector<8x96xf32> to vector<8x32xf32>
    %245 = arith.addf %243, %244 : vector<8x32xf32>
    %246 = arith.negf %245 : vector<8x32xf32>
    %247 = math.exp %246 : vector<8x32xf32>
    %cst_53 = arith.constant 1.000000e+00 : f32
    %248 = vector.broadcast %cst_53 : f32 to vector<8x32xf32>
    %249 = arith.addf %248, %247 : vector<8x32xf32>
    %250 = arith.divf %248, %249 : vector<8x32xf32>
    %251 = vector.extract_strided_slice %232 {offsets = [0, 64], sizes = [8, 32], strides = [1, 1]} : vector<8x96xf32> to vector<8x32xf32>
    %252 = vector.extract_strided_slice %234 {offsets = [0, 64], sizes = [8, 32], strides = [1, 1]} : vector<8x96xf32> to vector<8x32xf32>
    %253 = arith.mulf %242, %252 : vector<8x32xf32>
    %254 = arith.addf %251, %253 : vector<8x32xf32>
    %255 = math.tanh %254 : vector<8x32xf32>
    %cst_54 = arith.constant 1.000000e+00 : f32
    %256 = vector.broadcast %cst_54 : f32 to vector<8x32xf32>
    %257 = arith.subf %256, %250 : vector<8x32xf32>
    %258 = arith.mulf %257, %255 : vector<8x32xf32>
    %259 = arith.mulf %250, %231 : vector<8x32xf32>
    %260 = arith.addf %258, %259 : vector<8x32xf32>
    %261 = tpu.concatenate %260, %21 in 1 : vector<8x32xf32>, vector<8x32xf32> -> vector<8x64xf32>
    %cst_55 = arith.constant dense<0.000000e+00> : vector<8x96xf32>
    %262 = tpu.matmul %261, %4, %cst_55 {dimension_numbers = #tpu.dot_dimension_numbers<[1], [0], [0], [1], [0, 0, 1, 1], [], []>} : vector<8x64xf32>, vector<64x96xf32>, vector<8x96xf32> -> vector<8x96xf32>
    %263 = vector.extract_strided_slice %262 {offsets = [0, 0], sizes = [8, 32], strides = [1, 1]} : vector<8x96xf32> to vector<8x32xf32>
    %264 = vector.broadcast %9 : vector<1x32xf32> to vector<8x32xf32>
    %265 = arith.addf %263, %264 : vector<8x32xf32>
    %266 = vector.extract_strided_slice %262 {offsets = [0, 32], sizes = [8, 32], strides = [1, 1]} : vector<8x96xf32> to vector<8x32xf32>
    %267 = vector.extract_strided_slice %262 {offsets = [0, 64], sizes = [8, 32], strides = [1, 1]} : vector<8x96xf32> to vector<8x32xf32>
    %268 = arith.addf %265, %266 : vector<8x32xf32>
    %cst_56 = arith.constant dense<0.000000e+00> : vector<8x32xf32>
    %269 = tpu.matmul %268, %5, %cst_56 {dimension_numbers = #tpu.dot_dimension_numbers<[1], [0], [0], [1], [0, 0, 1, 1], [], []>} : vector<8x32xf32>, vector<32x32xf32>, vector<8x32xf32> -> vector<8x32xf32>
    %270 = vector.broadcast %10 : vector<1x32xf32> to vector<8x32xf32>
    %271 = arith.addf %269, %270 : vector<8x32xf32>
    %272 = arith.addf %271, %267 : vector<8x32xf32>
    %cst_57 = arith.constant 0.000000e+00 : f32
    %273 = vector.broadcast %cst_57 : f32 to vector<8x128xf32>
    %c0_58 = arith.constant 0 : index
    %c0_59 = arith.constant 0 : index
    %274 = vector.load %arg4[%c0_58, %c0_59] : memref<8x128xf32, #tpu.memory_space<vmem>>, vector<8x128xf32>
    tpu.vector_store %arg4[%c0_58, %c0_59], %273 {strides = array<i32>} : memref<8x128xf32, #tpu.memory_space<vmem>>, vector<8x128xf32>,
    %c0_60 = arith.constant 0 : index
    %c0_61 = arith.constant 0 : index
    %275 = vector.load %arg4[%c0_60, %c0_61] : memref<8x128xf32, #tpu.memory_space<vmem>>, vector<8x32xf32>
    tpu.vector_store %arg4[%c0_60, %c0_61], %272 {strides = array<i32>} : memref<8x128xf32, #tpu.memory_space<vmem>>, vector<8x32xf32>,
    return
  }
}

</mosaic_0001>

<bundles_post_ra>
// kernel: san_forward.2
= control target key start
LH: loop header
LB: loop body
LE: loop exit
PB: predicated region body
PF: predicated region fallthrough
CT: control target
= control target key end

     0   :  { %vm183_vm0 = vcmask 261120   ;;  %v2198_v23 = vmov 0.0|0.0   ;;  %vm2199_vm1 = vmmov 0   ;;  %v2200_v24 = vmov 0.0   ;;  %s2201_s7 = smov 64   ;;  %s2203_s14 = smov 32   ;;  %s2642_s0 = inlined_call_operand.vmem [shape: f32[128,32], index: 0, kind: input, shape index: {}]   ;;  %s2643_s1 = inlined_call_operand.vmem [shape: f32[192,128], index: 1, kind: input, shape index: {}]   ;;  %s2644_s2 = inlined_call_operand.vmem [shape: f32[16,128], index: 2, kind: input, shape index: {}]   ;;  %s2645_s3 = inlined_call_operand.vmem [shape: f32[8,2,16], index: 3, kind: input, shape index: {}]   ;;  %s2646_s4 = inlined_call_operand.<no memory space> [shape: f32[], index: 4, kind: input, shape index: {}]   ;;  %s2647_s5 = inlined_call_operand.vmem [shape: f32[8,128], index: 5, kind: output, shape index: {}]  }
   0x1   :  { %v2237_v0 = vstv %s2646_s4  ;;  %v137_v1 = vld [vmem:[%s2643_s1] sm:$0xff]  ;;  %v138_v2 = vld [vmem:[%s2643_s1 + $0x8] sm:$0xff]  ;;  %v139_v3 = vld [vmem:[%s2643_s1 + $0x10] sm:$0xff]  ;;  %2047 = vmatprep.subr.bf16.mxu1 %v2198_v23  ;;  %1895 = vmatprep.mubr.msk.f32.mxu1 %vm2199_vm1, %v2200_v24  ;;  %vm467_vm4 = vcmask 130048   ;;  %vm1502_vm5 = vcmask 523264  }
   0x2   :  { %v2039_v4 = vpack.c.bf16 %v138_v2, %v137_v1  ;;  %v140_v5 = vld [vmem:[%s2643_s1 + $0x18] sm:$0xff]  ;;  %v167_v6 = vld [vmem:[%s2642_s0] sm:$0xff]  ;;  %v168_v8 = vld [vmem:[%s2642_s0 + $0x8] sm:$0xff]  ;;  %1667 = vst [vmem:[%s2647_s5] sm:$0xff] %v2200_v24 }
   0x3   :  { %v2043_v7 = vpack.c.bf16 %v140_v5, %v139_v3  ;;  %1839 = vmatprep.mubr.msk.f32.mxu0 %vm183_vm0, %v167_v6  ;;  %v169_v9 = vld [vmem:[%s2642_s0 + $0x10] sm:$0xff]  ;;  %v170_v10 = vld [vmem:[%s2642_s0 + $0x18] sm:$0xff]  ;;  %v171_v11 = vld [vmem:[%s2642_s0 + $0x20] sm:$0xff]  ;;  %v20_v6 = vlaneseq }
   0x4   :  { %2040 = vmatprep.subr.bf16.mxu0 %v2039_v4  ;;  %v172_v12 = vld [vmem:[%s2642_s0 + $0x28] sm:$0xff]  ;;  %v173_v13 = vld [vmem:[%s2642_s0 + $0x30] sm:$0xff]  ;;  %v174_v14 = vld [vmem:[%s2642_s0 + $0x38] sm:$0xff] }
   0x5   :  { %2042 = vmatpush3.bf16.msra.mxu0 %v2039_v4  ;;  %v175_v15 = vld [vmem:[%s2642_s0 + $0x40] sm:$0xff]  ;;  %v176_v16 = vld [vmem:[%s2642_s0 + $0x48] sm:$0xff]  ;;  %v177_v17 = vld [vmem:[%s2642_s0 + $0x50] sm:$0xff] }
   0x6   :  { %2044 = vmatprep.subr.bf16.mxu0 %v2043_v7  ;;  %v178_v18 = vld [vmem:[%s2642_s0 + $0x58] sm:$0xff]  ;;  %v179_v19 = vld [vmem:[%s2642_s0 + $0x60] sm:$0xff]  ;;  %v180_v20 = vld [vmem:[%s2642_s0 + $0x68] sm:$0xff] }
   0x7   :  { %v181_v21 = vld [vmem:[%s2642_s0 + $0x70] sm:$0xff]  ;;  %v182_v22 = vld [vmem:[%s2642_s0 + $0x78] sm:$0xff]  ;;  %v141_v1 = vld [vmem:[%s2643_s1 + $0x20] sm:$0xff]  ;;  %s2202_s0 = smov 96  }
   0x8   :  { %v142_v2 = vld [vmem:[%s2643_s1 + $0x28] sm:$0xff] }
   0x9   :  { %2046 = vmatpush3.bf16.msra.mxu0 %v2043_v7  ;;  %v166_v4 = vld [vmem:[%s2644_s2 + $0x8] sm:$0xff]  ;;  %v2072_v5 = vpack.c.bf16 %v142_v2, %v141_v1  ;;  %v143_v7 = vld [vmem:[%s2643_s1 + $0x30] sm:$0xff] }
   0xc   :  { %1840 = vmatmul.mubr.msk.f32.vlgmr.msra.gmra.mrb[0].mxu0 %vm183_vm0, %v168_v8  ;;  %v144_v8 = vld [vmem:[%s2643_s1 + $0x38] sm:$0xff] }
   0xd   :  { %1842 = vmatprep.mubr.msk.f32.mxu0 %vm183_vm0, %v169_v9  ;;  %v2074_v9 = vpack.c.bf16 %v144_v8, %v143_v7 }
   0xf   :  { %2075 = vmatprep.subr.bf16.mxu0 %v2074_v9 }
  0x10   :  { %1843 = vmatmul.mubr.msk.f32.gmra.mrb[2].mxu0 %vm183_vm0, %v170_v10  ;;  %v2348_v10 = vshrl.u32 %v20_v6, 7 }
  0x11   :  { %1845 = vmatprep.mubr.msk.f32.mxu0 %vm183_vm0, %v171_v11  ;;  %v2350_v11 = vand.u32 127, %v20_v6  ;;  %2077 = vmatpush3.bf16.msra.mxu0 %v2074_v9  ;;  %v1676_v6 = vld [vmem:[%s2645_s3 + $0x8] sm:$0x3] }
  0x12   :  { %vm23_vm2 = vcmp.lt.s32.totalorder %v2348_v10, 2  ;;  %2090 = vmatprep.subr.bf16.mxu0 %v2198_v23 }
  0x13   :  { %vm28_vm3 = vcmp.lt.s32.totalorder %v2350_v11, 16  ;;  %v83_v9 = vsel %vm23_vm2, %v1676_v6, %v2237_v0 }
  0x14   :  { %1846 = vmatmul.mubr.msk.f32.gmra.mrb[4].mxu0 %vm183_vm0, %v172_v12  ;;  %v145_v12 = vld [vmem:[%s2643_s1 + $0x40] sm:$0xff] }
  0x15   :  { %1848 = vmatprep.mubr.msk.f32.mxu0 %vm183_vm0, %v173_v13  ;;  %v146_v13 = vld [vmem:[%s2643_s1 + $0x48] sm:$0xff] }
  0x18   :  { %1849 = vmatmul.mubr.msk.f32.gmra.mrb[6].mxu0 %vm183_vm0, %v174_v14  ;;  %v19_v14 = vld [vmem:[%s2645_s3] sm:$0x3] }
  0x19   :  { %1851 = vmatprep.mubr.msk.f32.mxu0 %vm183_vm0, %v175_v15  ;;  %v24_v15 = vsel %vm23_vm2, %v19_v14, %v2237_v0 }
  0x1c   :  { %1852 = vmatmul.mubr.msk.f32.gmra.mrb[8].mxu0 %vm183_vm0, %v176_v16  ;;  %v1673_v16 = vld [vmem:[%s2645_s3 + $0x2] sm:$0x3] }
  0x1d   :  { %1854 = vmatprep.mubr.msk.f32.mxu0 %vm183_vm0, %v177_v17  ;;  %v29_v17 = vsel %vm28_vm3, %v24_v15, %v2237_v0 }
  0x20   :  { %1855 = vmatmul.mubr.msk.f32.gmra.mrb[10].mxu0 %vm183_vm0, %v178_v18  ;;  %v38_v18 = vsel %vm23_vm2, %v1673_v16, %v2237_v0  ;;  %v88_v16 = vsel %vm28_vm3, %v83_v9, %v2237_v0 }
  0x21   :  { %1857 = vmatprep.mubr.msk.f32.mxu0 %vm183_vm0, %v179_v19  ;;  %v2376_v19 = vpack.c.bf16 %v146_v13, %v145_v12  ;;  %v1677_v12 = vld [vmem:[%s2645_s3 + $0xa] sm:$0x3]  ;;  %v1678_v13 = vld [vmem:[%s2645_s3 + $0xc] sm:$0x3] }
  0x24   :  { %1858 = vmatmul.mubr.msk.f32.gmra.mrb[12].mxu0 %vm183_vm0, %v180_v20  ;;  %v43_v20 = vsel %vm28_vm3, %v38_v18, %v2237_v0  ;;  %v113_v18 = vsel %vm23_vm2, %v1678_v13, %v2237_v0 }
  0x25   :  { %1860 = vmatprep.mubr.msk.f32.mxu0 %vm183_vm0, %v181_v21  ;;  %v147_v21 = vld [vmem:[%s2643_s1 + $0x50] sm:$0xff] }
  0x28   :  { %1861 = vmatmul.mubr.msk.f32.gmra.mrb[14].mxu0 %vm183_vm0, %v182_v22  ;;  %v148_v22 = vld [vmem:[%s2643_s1 + $0x58] sm:$0xff] }
  0x29   :  { %1909 = vmatprep.mubr.msk.f32.mxu0 %vm467_vm4, %v29_v17  ;;  %v98_v17 = vsel %vm23_vm2, %v1677_v12, %v2237_v0 }
  0x2c   :  { %1910 = vmatmul.mubr.msk.f32.vlgmr.msra.gmra.mrb[16].mxu0 %vm467_vm4, %v43_v20  ;;  %v1679_v20 = vld [vmem:[%s2645_s3 + $0xe] sm:$0x3] }
  0x2d   :  { %2092 = vmatpush3.bf16.msra.mxu0 %v2376_v19 }
  0x2e   :  { %2093 = vmatprep.subr.bf16.mxu0 %v2198_v23 }
  0xdf   :  { %v1841_v25 = vpop.f32.mrb[0].mxu0 }
  0xe0   :  { %v378_v26 = vmax.f32 %v1841_v25, 0.0  ;;  %v298_v27 = vpop.f32.mrb[1].mxu0  ;;  %v2391_v25 = vpack.c.bf16 %v148_v22, %v147_v21  ;;  %v103_v21 = vsel %vm28_vm3, %v98_v17, %v2237_v0  ;;  %v118_v22 = vsel %vm28_vm3, %v113_v18, %v2237_v0 }
  0xe1   :  { %v377_v28 = vmax.f32 %v298_v27, 0.0 }
  0xe2   :  { %2095 = vmatpush3.bf16.msra.mxu0 %v2391_v25 }
  0xe3   :  { %v1844_v29 = vpop.f32.mrb[2].mxu0  ;;  %v2048_v30 = vpack.c.bf16 %v378_v26, %v377_v28  ;;  %2102 = vmatprep.subr.bf16.mxu0 %v2198_v23 }
  0xe4   :  { %v380_v31 = vmax.f32 %v1844_v29, 0.0  ;;  %v308_v32 = vpop.f32.mrb[3].mxu0 }
  0xe5   :  { %v379_v33 = vmax.f32 %v308_v32, 0.0  ;;  %2049 = vmatpush3.bf16.msra.mxu1 %v2048_v30  ;;  %v2414_v32 = vld [vmem:[%s2644_s2 + $0x2] ss:$0 sm:$0xff] }
  0xe6   :  { %2050 = vmatprep.subr.bf16.mxu1 %v2198_v23 }
  0xe7   :  { %v2051_v34 = vpack.c.bf16 %v380_v31, %v379_v33  ;;  %v1847_v35 = vpop.f32.mrb[4].mxu0 }
  0xe8   :  { %v382_v36 = vmax.f32 %v1847_v35, 0.0  ;;  %v318_v37 = vpop.f32.mrb[5].mxu0 }
  0xe9   :  { %v381_v38 = vmax.f32 %v318_v37, 0.0  ;;  %2052 = vmatpush3.bf16.msra.mxu1 %v2051_v34 }
  0xea   :  { %2053 = vmatprep.subr.bf16.mxu1 %v2198_v23 }
  0xeb   :  { %v2054_v39 = vpack.c.bf16 %v382_v36, %v381_v38  ;;  %v1850_v40 = vpop.f32.mrb[6].mxu0  ;;  %v2421_v36 = vld [vmem:[%s2644_s2 + $0x1] ss:$0 sm:$0xff] }
  0xec   :  { %v384_v41 = vmax.f32 %v1850_v40, 0.0  ;;  %v328_v42 = vpop.f32.mrb[7].mxu0 }
  0xed   :  { %v383_v43 = vmax.f32 %v328_v42, 0.0  ;;  %2055 = vmatpush3.bf16.msra.mxu1 %v2054_v39 }
  0xee   :  { %2056 = vmatprep.subr.bf16.mxu1 %v2198_v23 }
  0xef   :  { %v2057_v44 = vpack.c.bf16 %v384_v41, %v383_v43  ;;  %v1853_v45 = vpop.f32.mrb[8].mxu0 }
  0xf0   :  { %v386_v46 = vmax.f32 %v1853_v45, 0.0  ;;  %v338_v47 = vpop.f32.mrb[9].mxu0 }
  0xf1   :  { %v385_v48 = vmax.f32 %v338_v47, 0.0  ;;  %2058 = vmatpush3.bf16.msra.mxu1 %v2057_v44 }
  0xf2   :  { %2059 = vmatprep.subr.bf16.mxu1 %v2198_v23 }
  0xf3   :  { %v2060_v49 = vpack.c.bf16 %v386_v46, %v385_v48  ;;  %v1856_v50 = vpop.f32.mrb[10].mxu0 }
  0xf4   :  { %v388_v51 = vmax.f32 %v1856_v50, 0.0  ;;  %v348_v52 = vpop.f32.mrb[11].mxu0 }
  0xf5   :  { %v387_v53 = vmax.f32 %v348_v52, 0.0  ;;  %2061 = vmatpush3.bf16.msra.mxu1 %v2060_v49 }
  0xf6   :  { %2062 = vmatprep.subr.bf16.mxu1 %v2198_v23 }
  0xf7   :  { %v2063_v54 = vpack.c.bf16 %v388_v51, %v387_v53  ;;  %v1859_v55 = vpop.f32.mrb[12].mxu0 }
  0xf8   :  { %v390_v56 = vmax.f32 %v1859_v55, 0.0  ;;  %v358_v57 = vpop.f32.mrb[13].mxu0 }
  0xf9   :  { %v389_v58 = vmax.f32 %v358_v57, 0.0  ;;  %2064 = vmatpush3.bf16.msra.mxu1 %v2063_v54 }
  0xfa   :  { %2065 = vmatprep.subr.bf16.mxu1 %v2198_v23 }
  0xfb   :  { %v2066_v59 = vpack.c.bf16 %v390_v56, %v389_v58  ;;  %v1862_v60 = vpop.f32.mrb[14].mxu0 }
  0xfc   :  { %v392_v61 = vmax.f32 %v1862_v60, 0.0  ;;  %v368_v62 = vpop.f32.mrb[15].mxu0 }
  0xfd   :  { %v391_v63 = vmax.f32 %v368_v62, 0.0  ;;  %2067 = vmatpush3.bf16.msra.mxu1 %v2066_v59 }
  0xfe   :  { %2068 = vmatprep.subr.bf16.mxu1 %v2198_v23 }
  0xff   :  { %v2069_v3 = vpack.c.bf16 %v392_v61, %v391_v63  ;;  %v1911_v28 = vpop.f32.mrb[16].mxu0 }
 0x100   :  { %v644_v29 = vpop.f32.mrb[17].mxu0  ;;  %v650_v57 = vadd.f32 %v1911_v28, %v2421_v36 }
 0x101   :  { %2070 = vmatpush3.bf16.msra.mxu1 %v2069_v3  ;;  %v645_v37 = vadd.f32 %v2421_v36, %v644_v29 }
 0x102   :  { %2071 = vmatprep.subr.bf16.mxu1 %v2198_v23 }
 0x104   :  { %1896 = vmatmul.mubr.f32.vlgmr.msra.gmra.mrb[0].mxu1 %v166_v4  ;;  %v1674_v4 = vld [vmem:[%s2645_s3 + $0x4] sm:$0x3] }
 0x105   :  { %2073 = vmatpush3.bf16.msra.mxu1 %v2072_v5  ;;  %1902 = vmatprep.mubr.msk.f32.mxu1 %vm2199_vm1, %v2200_v24  ;;  %v1675_v5 = vld [vmem:[%s2645_s3 + $0x6] sm:$0x3]  ;;  %v53_v7 = vsel %vm23_vm2, %v1674_v4, %v2237_v0 }
 0x106   :  { %2078 = vmatprep.subr.bf16.mxu1 %v2198_v23  ;;  %v68_v8 = vsel %vm23_vm2, %v1675_v5, %v2237_v0  ;;  %v58_v14 = vsel %vm28_vm3, %v53_v7, %v2237_v0 }
 0x107   :  { %v73_v15 = vsel %vm28_vm3, %v68_v8, %v2237_v0  ;;  %1912 = vmatprep.mubr.msk.f32.mxu0 %vm467_vm4, %v58_v14 }
 0x108   :  { %1913 = vmatmul.mubr.msk.f32.gmra.mrb[18].mxu0 %vm467_vm4, %v73_v15 }
 0x109   :  { %1915 = vmatprep.mubr.msk.f32.mxu0 %vm467_vm4, %v88_v16 }
 0x10c   :  { %1916 = vmatmul.mubr.msk.f32.gmra.mrb[20].mxu0 %vm467_vm4, %v103_v21 }
 0x10d   :  { %1918 = vmatprep.mubr.msk.f32.mxu0 %vm467_vm4, %v118_v22 }
 0x1d7   :  { %v459_v26 = vpop.f32.mrb[0].mxu1 }
 0x1d8   :  { %v1897_v27 = vpop.f32.mrb[1].mxu1  ;;  %1903 = vmatmul.mubr.msk.f32.vlgmr.msra.gmra.mrb[2].mxu1 %vm467_vm4, %v459_v26  ;;  %v128_v26 = vsel %vm23_vm2, %v1679_v20, %v2237_v0 }
 0x1d9   :  { %2080 = vmatpush3.bf16.msra.mxu1 %v2376_v19  ;;  %1929 = vmatprep.mubr.msk.f32.mxu1 %vm2199_vm1, %v2200_v24  ;;  %v133_v28 = vsel %vm28_vm3, %v128_v26, %v2237_v0 }
 0x1da   :  { %2081 = vmatprep.subr.bf16.mxu1 %v2198_v23  ;;  %1919 = vmatmul.mubr.msk.f32.gmra.mrb[22].mxu0 %vm467_vm4, %v133_v28 }
 0x1db   :  { %1951 = vmatprep.mubr.msk.f32.mxu0 %vm2199_vm1, %v2200_v24 }
 0x1dd   :  { %2083 = vmatpush3.bf16.msra.mxu1 %v2391_v25 }
 0x1de   :  { %2084 = vmatprep.subr.bf16.mxu1 %v2198_v23 }
 0x1e0   :  { %1930 = vmatmul.mubr.f32.vlgmr.msra.gmra.mrb[4].mxu1 %v2200_v24 }
 0x1e1   :  { %2086 = vmatpush3.bf16.msra.mxu1 %v2376_v19  ;;  %1940 = vmatprep.mubr.msk.f32.mxu1 %vm2199_vm1, %v2200_v24 }
 0x1e2   :  { %2087 = vmatprep.subr.bf16.mxu1 %v2198_v23 }
 0x1e5   :  { %2089 = vmatpush3.bf16.msra.mxu1 %v2391_v25 }
 0x1e6   :  { %2096 = vmatprep.subr.bf16.mxu1 %v2198_v23 }
 0x2ab   :  { %v2409_v30 = vpop.f32.mrb[2].mxu1 }
 0x2ac   :  { %v1904_v31 = vpop.f32.mrb[3].mxu1 }
 0x2b3   :  { %v756_v33 = vpop.f32.mrb[4].mxu1 }
 0x2b4   :  { %v757_v34 = vadd.f32 %v2414_v32, %v756_v33  ;;  %v1931_v35 = vpop.f32.mrb[5].mxu1 }
 0x2b5   :  { %v1914_v35 = vpop.f32.mrb[18].mxu0 }
 0x2b6   :  { %768 = vrot.lane.b32.xlu0 %v757_v34, %s2201_s7  ;;  %v760_v38 = vadd.f32 %v757_v34, %v645_v37 }
 0x2b8   :  { %v1708_v39 = vmul.f32 -1.442695, %v760_v38 }
 0x2ba   :  { %2150 = vpow2.f32 %v1708_v39 }
 0x2c4   :  { %v2151_v40 = vpop.eup %2150 }
 0x2c5   :  { %v764_v41 = vadd.f32 1.0, %v2151_v40 }
 0x2c7   :  { %2152 = vrcp.f32 %v764_v41 }
 0x2d1   :  { %v2153_v42 = vpop.eup %2152 }
 0x2d2   :  { %v778_v48 = vsub.f32 1.0, %v2153_v42  ;;  %v784_v50 = vmul.f32 0.0, %v2153_v42 }
 0x328   :  { %v769_v43 = vpop.permute.xlu0 %768 }
 0x329   :  { %v771_v44 = vmul.f32 %v2153_v42, %v769_v43 }
 0x32b   :  { %773 = vrot.lane.b32.xlu0 %v771_v44, %s2201_s7 }
 0x39d   :  { %v774_v45 = vpop.permute.xlu0 %773 }
 0x39e   :  { %v776_v46 = vadd.f32 %v774_v45, %v645_v37  ;;  %v654_v37 = vpop.f32.mrb[19].mxu0 }
 0x39f   :  { %v2502_v38 = vpop.f32.mrb[20].mxu0  ;;  %v655_v44 = vadd.f32 %v2421_v36, %v654_v37 }
 0x3a0   :  { %2154 = vtanh.f32 %v776_v46  ;;  %v2504_v39 = vpop.f32.mrb[21].mxu0 }
 0x3a1   :  { %v2506_v11 = vpop.f32.mrb[22].mxu0 }
 0x3a2   :  { %v2508_v0 = vpop.f32.mrb[23].mxu0 }
 0x3aa   :  { %v2155_v47 = vpop.eup %2154 }
 0x3ab   :  { %780 = vrot.lane.b32.xlu1 %v2155_v47, %s2202_s0 }
 0x41d   :  { %v781_v49 = vpop.permute.xlu1 %780 }
 0x41e   :  { %v783_v51 = vmul.f32 %v781_v49, %v778_v48 }
 0x420   :  { %v785_v52 = vadd.f32 %v784_v50, %v783_v51 }
 0x422   :  { %787 = vrot.lane.b32.xlu1 %v785_v52, %s2202_s0 }
 0x494   :  { %v788_v53 = vpop.permute.xlu1 %787 }
 0x495   :  { %1941 = vmatmul.mubr.msk.f32.vlgmr.msra.gmra.mrb[6].mxu1 %vm183_vm0, %v788_v53 }
 0x496   :  { %2098 = vmatpush3.bf16.msra.mxu1 %v2376_v19  ;;  %1962 = vmatprep.mubr.msk.f32.mxu1 %vm2199_vm1, %v2200_v24 }
 0x497   :  { %2099 = vmatprep.subr.bf16.mxu1 %v2198_v23 }
 0x49a   :  { %2101 = vmatpush3.bf16.msra.mxu1 %v2391_v25 }
 0x49b   :  { %2108 = vmatprep.subr.bf16.mxu1 %v2198_v23 }
 0x568   :  { %v857_v54 = vpop.f32.mrb[6].mxu1 }
 0x569   :  { %v858_v55 = vadd.f32 %v2414_v32, %v857_v54  ;;  %v1942_v56 = vpop.f32.mrb[7].mxu1 }
 0x56b   :  { %869 = vrot.lane.b32.xlu0 %v858_v55, %s2201_s7  ;;  %v861_v58 = vadd.f32 %v858_v55, %v650_v57 }
 0x56d   :  { %v1710_v59 = vmul.f32 -1.442695, %v861_v58 }
 0x56f   :  { %2156 = vpow2.f32 %v1710_v59 }
 0x579   :  { %v2157_v60 = vpop.eup %2156 }
 0x57a   :  { %v865_v61 = vadd.f32 1.0, %v2157_v60 }
 0x57c   :  { %2158 = vrcp.f32 %v865_v61 }
 0x586   :  { %v2159_v62 = vpop.eup %2158 }
 0x587   :  { %v879_v29 = vsub.f32 1.0, %v2159_v62  ;;  %v885_v10 = vmul.f32 %v2159_v62, %v785_v52 }
 0x5dd   :  { %v870_v63 = vpop.permute.xlu0 %869 }
 0x5de   :  { %v872_v1 = vmul.f32 %v2159_v62, %v870_v63 }
 0x5e0   :  { %874 = vrot.lane.b32.xlu1 %v872_v1, %s2201_s7  ;;  %v660_v1 = vadd.f32 %v1914_v35, %v2421_v36 }
 0x652   :  { %v875_v2 = vpop.permute.xlu1 %874 }
 0x653   :  { %v877_v3 = vadd.f32 %v875_v2, %v650_v57 }
 0x655   :  { %2160 = vtanh.f32 %v877_v3 }
 0x65f   :  { %v2161_v27 = vpop.eup %2160 }
 0x660   :  { %881 = vrot.lane.b32.xlu0 %v2161_v27, %s2202_s0  ;;  %v665_v27 = vadd.f32 %v2421_v36, %v2504_v39 }
 0x6d2   :  { %v882_v31 = vpop.permute.xlu0 %881 }
 0x6d3   :  { %v884_v33 = vmul.f32 %v882_v31, %v879_v29 }
 0x6d5   :  { %v886_v34 = vadd.f32 %v885_v10, %v884_v33 }
 0x6d7   :  { %888 = vrot.lane.b32.xlu1 %v886_v34, %s2202_s0 }
 0x749   :  { %v889_v40 = vpop.permute.xlu1 %888 }
 0x74a   :  { %1952 = vmatmul.mubr.msk.f32.vlgmr.msra.gmra.mrb[24].mxu0 %vm183_vm0, %v889_v40 }
 0x74b   :  { %2104 = vmatpush3.bf16.msra.mxu0 %v2376_v19  ;;  %1973 = vmatprep.mubr.msk.f32.mxu0 %vm2199_vm1, %v2200_v24 }
 0x74c   :  { %2105 = vmatprep.subr.bf16.mxu0 %v2198_v23 }
 0x74f   :  { %2107 = vmatpush3.bf16.msra.mxu0 %v2391_v25 }
 0x750   :  { %2114 = vmatprep.subr.bf16.mxu0 %v2198_v23 }
 0x81d   :  { %v958_v41 = vpop.f32.mrb[24].mxu0 }
 0x81e   :  { %v959_v42 = vadd.f32 %v2414_v32, %v958_v41  ;;  %v1953_v43 = vpop.f32.mrb[25].mxu0 }
 0x820   :  { %970 = vrot.lane.b32.xlu0 %v959_v42, %s2201_s7  ;;  %v962_v45 = vadd.f32 %v959_v42, %v655_v44 }
 0x822   :  { %v1712_v46 = vmul.f32 -1.442695, %v962_v45 }
 0x824   :  { %2162 = vpow2.f32 %v1712_v46 }
 0x82e   :  { %v2163_v47 = vpop.eup %2162 }
 0x82f   :  { %v966_v48 = vadd.f32 1.0, %v2163_v47 }
 0x831   :  { %2164 = vrcp.f32 %v966_v48 }
 0x83b   :  { %v2165_v49 = vpop.eup %2164 }
 0x83c   :  { %v980_v55 = vsub.f32 1.0, %v2165_v49  ;;  %v986_v57 = vmul.f32 %v2165_v49, %v886_v34 }
 0x892   :  { %v971_v50 = vpop.permute.xlu0 %970 }
 0x893   :  { %v973_v51 = vmul.f32 %v2165_v49, %v971_v50  ;;  %v670_v50 = vadd.f32 %v2502_v38, %v2421_v36 }
 0x895   :  { %975 = vrot.lane.b32.xlu1 %v973_v51, %s2201_s7 }
 0x907   :  { %v976_v52 = vpop.permute.xlu1 %975 }
 0x908   :  { %v978_v53 = vadd.f32 %v976_v52, %v655_v44 }
 0x90a   :  { %2166 = vtanh.f32 %v978_v53 }
 0x914   :  { %v2167_v54 = vpop.eup %2166 }
 0x915   :  { %982 = vrot.lane.b32.xlu0 %v2167_v54, %s2202_s0 }
 0x987   :  { %v983_v56 = vpop.permute.xlu0 %982 }
 0x988   :  { %v985_v58 = vmul.f32 %v983_v56, %v980_v55 }
 0x98a   :  { %v987_v59 = vadd.f32 %v986_v57, %v985_v58 }
 0x98c   :  { %989 = vrot.lane.b32.xlu1 %v987_v59, %s2202_s0 }
 0x9fe   :  { %v990_v60 = vpop.permute.xlu1 %989 }
 0x9ff   :  { %1963 = vmatmul.mubr.msk.f32.vlgmr.msra.gmra.mrb[8].mxu1 %vm183_vm0, %v990_v60 }
 0xa00   :  { %2110 = vmatpush3.bf16.msra.mxu1 %v2376_v19  ;;  %1984 = vmatprep.mubr.msk.f32.mxu1 %vm2199_vm1, %v2200_v24 }
 0xa01   :  { %2111 = vmatprep.subr.bf16.mxu1 %v2198_v23 }
 0xa04   :  { %2113 = vmatpush3.bf16.msra.mxu1 %v2391_v25 }
 0xa05   :  { %2120 = vmatprep.subr.bf16.mxu1 %v2198_v23 }
 0xad2   :  { %v1059_v61 = vpop.f32.mrb[8].mxu1 }
 0xad3   :  { %v1060_v62 = vadd.f32 %v2414_v32, %v1059_v61  ;;  %v1964_v63 = vpop.f32.mrb[9].mxu1 }
 0xad5   :  { %1071 = vrot.lane.b32.xlu0 %v1060_v62, %s2201_s7  ;;  %v1063_v2 = vadd.f32 %v1060_v62, %v660_v1 }
 0xad7   :  { %v1714_v3 = vmul.f32 -1.442695, %v1063_v2 }
 0xad9   :  { %2168 = vpow2.f32 %v1714_v3 }
 0xae3   :  { %v2169_v4 = vpop.eup %2168 }
 0xae4   :  { %v1067_v5 = vadd.f32 1.0, %v2169_v4  ;;  %v675_v4 = vadd.f32 %v2421_v36, %v2508_v0 }
 0xae6   :  { %2170 = vrcp.f32 %v1067_v5 }
 0xaf0   :  { %v2171_v6 = vpop.eup %2170 }
 0xaf1   :  { %v1081_v14 = vsub.f32 1.0, %v2171_v6  ;;  %v1087_v16 = vmul.f32 %v2171_v6, %v987_v59 }
 0xb47   :  { %v1072_v7 = vpop.permute.xlu0 %1071 }
 0xb48   :  { %v1074_v8 = vmul.f32 %v2171_v6, %v1072_v7 }
 0xb4a   :  { %1076 = vrot.lane.b32.xlu1 %v1074_v8, %s2201_s7 }
 0xbbc   :  { %v1077_v9 = vpop.permute.xlu1 %1076 }
 0xbbd   :  { %v1079_v12 = vadd.f32 %v1077_v9, %v660_v1 }
 0xbbf   :  { %2172 = vtanh.f32 %v1079_v12 }
 0xbc9   :  { %v2173_v13 = vpop.eup %2172 }
 0xbca   :  { %1083 = vrot.lane.b32.xlu0 %v2173_v13, %s2202_s0 }
 0xc3c   :  { %v1084_v15 = vpop.permute.xlu0 %1083 }
 0xc3d   :  { %v1086_v17 = vmul.f32 %v1084_v15, %v1081_v14 }
 0xc3f   :  { %v1088_v18 = vadd.f32 %v1087_v16, %v1086_v17 }
 0xc41   :  { %1090 = vrot.lane.b32.xlu1 %v1088_v18, %s2202_s0 }
 0xcb3   :  { %v1091_v20 = vpop.permute.xlu1 %1090 }
 0xcb4   :  { %1974 = vmatmul.mubr.msk.f32.vlgmr.msra.gmra.mrb[26].mxu0 %vm183_vm0, %v1091_v20 }
 0xcb5   :  { %2116 = vmatpush3.bf16.msra.mxu0 %v2376_v19  ;;  %1995 = vmatprep.mubr.msk.f32.mxu0 %vm2199_vm1, %v2200_v24 }
 0xcb6   :  { %2117 = vmatprep.subr.bf16.mxu0 %v2198_v23 }
 0xcb9   :  { %2119 = vmatpush3.bf16.msra.mxu0 %v2391_v25 }
 0xcba   :  { %2126 = vmatprep.subr.bf16.mxu0 %v2198_v23 }
 0xd87   :  { %v1160_v21 = vpop.f32.mrb[26].mxu0 }
 0xd88   :  { %v1161_v22 = vadd.f32 %v2414_v32, %v1160_v21  ;;  %v1975_v26 = vpop.f32.mrb[27].mxu0 }
 0xd8a   :  { %1172 = vrot.lane.b32.xlu0 %v1161_v22, %s2201_s7  ;;  %v1164_v28 = vadd.f32 %v1161_v22, %v665_v27 }
 0xd8c   :  { %v1716_v29 = vmul.f32 -1.442695, %v1164_v28 }
 0xd8e   :  { %2174 = vpow2.f32 %v1716_v29  ;;  %v680_v29 = vadd.f32 %v2506_v11, %v2421_v36  ;;  %v150_v36 = vld [vmem:[%s2643_s1 + $0x68] sm:$0xff]  ;;  %v151_v11 = vld [vmem:[%s2643_s1 + $0x70] sm:$0xff] }
 0xd98   :  { %v2175_v31 = vpop.eup %2174 }
 0xd99   :  { %v1168_v10 = vadd.f32 1.0, %v2175_v31 }
 0xd9b   :  { %2176 = vrcp.f32 %v1168_v10 }
 0xda5   :  { %v2177_v33 = vpop.eup %2176 }
 0xda6   :  { %v1182_v42 = vsub.f32 1.0, %v2177_v33  ;;  %v1188_v39 = vmul.f32 %v2177_v33, %v1088_v18 }
 0xdfc   :  { %v1173_v34 = vpop.permute.xlu0 %1172 }
 0xdfd   :  { %v1175_v35 = vmul.f32 %v2177_v33, %v1173_v34 }
 0xdff   :  { %1177 = vrot.lane.b32.xlu1 %v1175_v35, %s2201_s7 }
 0xe71   :  { %v1178_v37 = vpop.permute.xlu1 %1177 }
 0xe72   :  { %v1180_v40 = vadd.f32 %v1178_v37, %v665_v27 }
 0xe74   :  { %2178 = vtanh.f32 %v1180_v40 }
 0xe7e   :  { %v2179_v41 = vpop.eup %2178 }
 0xe7f   :  { %1184 = vrot.lane.b32.xlu0 %v2179_v41, %s2202_s0 }
 0xef1   :  { %v1185_v43 = vpop.permute.xlu0 %1184 }
 0xef2   :  { %v1187_v44 = vmul.f32 %v1185_v43, %v1182_v42  ;;  %v152_v43 = vld [vmem:[%s2643_s1 + $0x78] sm:$0xff] }
 0xef4   :  { %v1189_v45 = vadd.f32 %v1188_v39, %v1187_v44  ;;  %v2130_v39 = vpack.c.bf16 %v152_v43, %v151_v11  ;;  %v1696_v44 = vld [vmem:[%s2644_s2] ss:$0 sm:$0xff] }
 0xef6   :  { %1191 = vrot.lane.b32.xlu1 %v1189_v45, %s2202_s0 }
 0xf68   :  { %v1192_v46 = vpop.permute.xlu1 %1191 }
 0xf69   :  { %1985 = vmatmul.mubr.msk.f32.vlgmr.msra.gmra.mrb[10].mxu1 %vm183_vm0, %v1192_v46  ;;  %v154_v46 = vld [vmem:[%s2643_s1 + $0x88] sm:$0xff] }
 0xf6a   :  { %2122 = vmatpush3.bf16.msra.mxu1 %v2376_v19  ;;  %2006 = vmatprep.mubr.msk.f32.mxu1 %vm2199_vm1, %v2200_v24 }
 0xf6b   :  { %2123 = vmatprep.subr.bf16.mxu1 %v2198_v23 }
 0xf6e   :  { %2125 = vmatpush3.bf16.msra.mxu1 %v2391_v25 }
 0xf6f   :  { %2138 = vmatprep.subr.bf16.mxu1 %v2198_v23 }
0x103c   :  { %v1261_v47 = vpop.f32.mrb[10].mxu1 }
0x103d   :  { %v1262_v48 = vadd.f32 %v2414_v32, %v1261_v47  ;;  %v1986_v49 = vpop.f32.mrb[11].mxu1  ;;  %v538_v47 = vadd.f32 %v1696_v44, %v2409_v30 }
0x103f   :  { %1273 = vrot.lane.b32.xlu0 %v1262_v48, %s2201_s7  ;;  %v1265_v51 = vadd.f32 %v1262_v48, %v670_v50 }
0x1041   :  { %v1718_v19 = vmul.f32 -1.442695, %v1265_v51  ;;  %v156_v51 = vld [vmem:[%s2643_s1 + $0x98] sm:$0xff] }
0x1043   :  { %2180 = vpow2.f32 %v1718_v19  ;;  %v541_v19 = vmax.f32 %v538_v47, 0.0 }
0x104d   :  { %v2181_v52 = vpop.eup %2180 }
0x104e   :  { %v1269_v53 = vadd.f32 1.0, %v2181_v52 }
0x1050   :  { %2182 = vrcp.f32 %v1269_v53 }
0x105a   :  { %v2183_v54 = vpop.eup %2182 }
0x105b   :  { %v1283_v59 = vsub.f32 1.0, %v2183_v54  ;;  %v1289_v38 = vmul.f32 %v2183_v54, %v1189_v45  ;;  %v153_v45 = vld [vmem:[%s2643_s1 + $0x80] sm:$0xff] }
0x105c   :  { %v2133_v48 = vpack.c.bf16 %v154_v46, %v153_v45 }
0x10b1   :  { %v1274_v55 = vpop.permute.xlu0 %1273 }
0x10b2   :  { %v1276_v25 = vmul.f32 %v2183_v54, %v1274_v55 }
0x10b4   :  { %1278 = vrot.lane.b32.xlu1 %v1276_v25, %s2201_s7 }
0x1126   :  { %v1279_v56 = vpop.permute.xlu1 %1278 }
0x1127   :  { %v1281_v57 = vadd.f32 %v1279_v56, %v670_v50  ;;  %v155_v50 = vld [vmem:[%s2643_s1 + $0x90] sm:$0xff] }
0x1128   :  { %v2136_v52 = vpack.c.bf16 %v156_v51, %v155_v50 }
0x1129   :  { %2184 = vtanh.f32 %v1281_v57 }
0x1133   :  { %v2185_v58 = vpop.eup %2184 }
0x1134   :  { %1285 = vrot.lane.b32.xlu0 %v2185_v58, %s2202_s0 }
0x11a6   :  { %v1286_v60 = vpop.permute.xlu0 %1285 }
0x11a7   :  { %v1288_v61 = vmul.f32 %v1286_v60, %v1283_v59  ;;  %v157_v59 = vld [vmem:[%s2643_s1 + $0xa0] sm:$0xff]  ;;  %v158_v60 = vld [vmem:[%s2643_s1 + $0xa8] sm:$0xff] }
0x11a9   :  { %v1290_v62 = vadd.f32 %v1289_v38, %v1288_v61  ;;  %v159_v38 = vld [vmem:[%s2643_s1 + $0xb0] sm:$0xff]  ;;  %v2139_v61 = vpack.c.bf16 %v158_v60, %v157_v59 }
0x11ab   :  { %1292 = vrot.lane.b32.xlu1 %v1290_v62, %s2202_s0 }
0x121d   :  { %v1293_v63 = vpop.permute.xlu1 %1292 }
0x121e   :  { %1996 = vmatmul.mubr.msk.f32.vlgmr.msra.gmra.mrb[28].mxu0 %vm183_vm0, %v1293_v63 }
0x121f   :  { %2025 = vmatprep.mubr.msk.f32.mxu0 %vm2199_vm1, %v2200_v24 }
0x12f1   :  { %v1362_v1 = vpop.f32.mrb[28].mxu0 }
0x12f2   :  { %v1363_v2 = vadd.f32 %v2414_v32, %v1362_v1  ;;  %v1997_v3 = vpop.f32.mrb[29].mxu0 }
0x12f3   :  { %v1724_v3 = vld [vmem:[%s2644_s2 + $0x3] ss:$0 sm:$0xff] }
0x12f4   :  { %1374 = vrot.lane.b32.xlu0 %v1363_v2, %s2201_s7  ;;  %v1366_v5 = vadd.f32 %v1363_v2, %v675_v4 }
0x12f6   :  { %v1720_v6 = vmul.f32 -1.442695, %v1366_v5 }
0x12f8   :  { %2186 = vpow2.f32 %v1720_v6 }
0x1302   :  { %v2187_v7 = vpop.eup %2186 }
0x1303   :  { %v1370_v8 = vadd.f32 1.0, %v2187_v7 }
0x1305   :  { %2188 = vrcp.f32 %v1370_v8 }
0x130f   :  { %v2189_v9 = vpop.eup %2188 }
0x1310   :  { %v1384_v17 = vsub.f32 1.0, %v2189_v9  ;;  %v1390_v0 = vmul.f32 %v2189_v9, %v1290_v62  ;;  %v160_v62 = vld [vmem:[%s2643_s1 + $0xb8] sm:$0xff] }
0x1311   :  { %v2142_v63 = vpack.c.bf16 %v160_v62, %v159_v38 }
0x1366   :  { %v1375_v12 = vpop.permute.xlu0 %1374 }
0x1367   :  { %v1377_v13 = vmul.f32 %v2189_v9, %v1375_v12 }
0x1369   :  { %1379 = vrot.lane.b32.xlu1 %v1377_v13, %s2201_s7 }
0x13db   :  { %v1380_v14 = vpop.permute.xlu1 %1379 }
0x13dc   :  { %v1382_v15 = vadd.f32 %v1380_v14, %v675_v4 }
0x13de   :  { %2190 = vtanh.f32 %v1382_v15 }
0x13e8   :  { %v2191_v16 = vpop.eup %2190 }
0x13e9   :  { %1386 = vrot.lane.b32.xlu0 %v2191_v16, %s2202_s0 }
0x145b   :  { %v1387_v18 = vpop.permute.xlu0 %1386 }
0x145c   :  { %v1389_v20 = vmul.f32 %v1387_v18, %v1384_v17 }
0x145e   :  { %v1391_v21 = vadd.f32 %v1390_v0, %v1389_v20 }
0x1460   :  { %1393 = vrot.lane.b32.xlu1 %v1391_v21, %s2202_s0 }
0x14d2   :  { %v1394_v22 = vpop.permute.xlu1 %1393 }
0x14d3   :  { %2007 = vmatmul.mubr.msk.f32.vlgmr.msra.gmra.mrb[12].mxu1 %vm183_vm0, %v1394_v22 }
0x14d4   :  { %2036 = vmatprep.mubr.msk.f32.mxu1 %vm2199_vm1, %v2200_v24  ;;  %2140 = vmatpush3.bf16.msra.mxu1 %v2139_v61 }
0x14d5   :  { %2141 = vmatprep.subr.bf16.mxu1 %v2198_v23 }
0x14d8   :  { %2143 = vmatpush3.bf16.msra.mxu1 %v2142_v63 }
0x15a6   :  { %v1463_v26 = vpop.f32.mrb[12].mxu1 }
0x15a7   :  { %v1464_v27 = vadd.f32 %v2414_v32, %v1463_v26  ;;  %v2008_v28 = vpop.f32.mrb[13].mxu1  ;;  %v149_v32 = vld [vmem:[%s2643_s1 + $0x60] sm:$0xff] }
0x15a8   :  { %v2127_v42 = vpack.c.bf16 %v150_v36, %v149_v32 }
0x15a9   :  { %1475 = vrot.lane.b32.xlu0 %v1464_v27, %s2201_s7  ;;  %v1467_v31 = vadd.f32 %v1464_v27, %v680_v29 }
0x15aa   :  { %2128 = vmatpush3.bf16.msra.mxu0 %v2127_v42 }
0x15ab   :  { %v1722_v10 = vmul.f32 -1.442695, %v1467_v31  ;;  %2129 = vmatprep.subr.bf16.mxu0 %v2198_v23 }
0x15ad   :  { %2192 = vpow2.f32 %v1722_v10 }
0x15ae   :  { %2131 = vmatpush3.bf16.msra.mxu0 %v2130_v39 }
0x15af   :  { %2132 = vmatprep.subr.bf16.mxu0 %v2198_v23 }
0x15b2   :  { %2134 = vmatpush3.bf16.msra.mxu0 %v2133_v48 }
0x15b3   :  { %2135 = vmatprep.subr.bf16.mxu0 %v2198_v23  ;;  %v1725_v23 = vld [vmem:[%s2644_s2 + $0x4] ss:$0 sm:$0xff] }
0x15b6   :  { %2137 = vmatpush3.bf16.msra.mxu0 %v2136_v52 }
0x15b7   :  { %v2193_v33 = vpop.eup %2192 }
0x15b8   :  { %v1471_v34 = vadd.f32 1.0, %v2193_v33 }
0x15ba   :  { %2194 = vrcp.f32 %v1471_v34 }
0x15c4   :  { %v2195_v35 = vpop.eup %2194 }
0x15c5   :  { %v1485_v30 = vsub.f32 1.0, %v2195_v35  ;;  %v1491_v54 = vmul.f32 %v2195_v35, %v1391_v21 }
0x161b   :  { %v1476_v37 = vpop.permute.xlu0 %1475 }
0x161c   :  { %v1478_v40 = vmul.f32 %v2195_v35, %v1476_v37 }
0x161e   :  { %1480 = vrot.lane.b32.xlu1 %v1478_v40, %s2201_s7 }
0x1690   :  { %v1481_v24 = vpop.permute.xlu1 %1480 }
0x1691   :  { %v1483_v41 = vadd.f32 %v1481_v24, %v680_v29 }
0x1693   :  { %2196 = vtanh.f32 %v1483_v41 }
0x169d   :  { %v2197_v49 = vpop.eup %2196 }
0x169e   :  { %1487 = vrot.lane.b32.xlu0 %v2197_v49, %s2202_s0 }
0x16a2   :  { %1498 = vrot.lane.b32.xlu0 %v541_v19, %s2203_s14 }
0x1710   :  { %v1488_v53 = vpop.permute.xlu0 %1487 }
0x1711   :  { %v1490_v55 = vmul.f32 %v1488_v53, %v1485_v30 }
0x1713   :  { %v1492_v25 = vadd.f32 %v1491_v54, %v1490_v55 }
0x1714   :  { %v1499_v56 = vpop.permute.xlu0 %1498 }
0x1715   :  { %1494 = vrot.lane.b32.xlu1 %v1492_v25, %s2202_s0 }
0x1787   :  { %v1495_v57 = vpop.permute.xlu1 %1494 }
0x1788   :  { %v1501_v58 = vsel %vm183_vm0, %v1495_v57, %v1499_v56 }
0x1789   :  { %2026 = vmatmul.mubr.msk.f32.vlgmr.msra.gmra.mrb[30].mxu0 %vm1502_vm5, %v1501_v58 }
0x185c   :  { %v1572_v1 = vpop.f32.mrb[30].mxu0 }
0x185d   :  { %1663 = vrot.lane.b32.xlu0 %v1572_v1, %s2201_s7  ;;  %1582 = vrot.lane.b32.xlu1 %v1572_v1, %s2202_s0  ;;  %v2027_v2 = vpop.f32.mrb[31].mxu0  ;;  %v1580_v4 = vadd.f32 %v1724_v3, %v1572_v1 }
0x18cf   :  { %v1583_v5 = vpop.permute.xlu1 %1582  ;;  %v1664_v12 = vpop.permute.xlu0 %1663 }
0x18d0   :  { %v1585_v6 = vadd.f32 %v1583_v5, %v1580_v4 }
0x18d2   :  { %2037 = vmatmul.mubr.msk.f32.vlgmr.msra.gmra.mrb[14].mxu1 %vm183_vm0, %v1585_v6 }
0x19a5   :  { %v1659_v7 = vpop.f32.mrb[14].mxu1 }
0x19a6   :  { %v1660_v8 = vadd.f32 %v1725_v23, %v1659_v7  ;;  %v2038_v9 = vpop.f32.mrb[15].mxu1 }
0x19a8   :  { %v1666_v13 = vadd.f32 %v1664_v12, %v1660_v8 }
0x19aa   :  { %1668 = vst.msk [vmem:[%s2647_s5] sm:$0xff] %vm183_vm0, %v1666_v13 }

</bundles_post_ra>
